<compile_context>
chip_gen: v6e
topology: v6e:2x2x1
jax: 0.10.0
libtpu: 0.0.40
codegen_flags: <defaults>
</compile_context>

<pallas_src>
import functools

import jax
import jax.numpy as jnp
from jax.experimental import pallas as pl
from jax.experimental.pallas import tpu as pltpu


# ---------------------------------------------------------------------------
# Kernel body
# ---------------------------------------------------------------------------
def _make_rb_kernel(B, H, W, C, scale):
    """Fused RB kernel: conv3x3 -> ReLU -> conv3x3 (shared weights) -> *C + x.

    Operates on one block of B batch images in NHWC (C on the lane axis).
      x_ref : (B, H, W, C)   float32   (residual path kept in f32)
      w_ref : (3*C, 3*C)     compute dtype; w[dy*C+ci, dx*C+co] = wgt[dy,dx,ci,co]
      o_ref : (B, H, W, C)   float32
    """
    M = B * H * W

    def rb_kernel(x_ref, w_ref, o_ref):
        x = x_ref[...]                       # (B, H, W, C) f32
        w = w_ref[...]                       # (3C, 3C) compute dtype
        cd = w_ref.dtype                     # MXU operand dtype (bf16 or f32)

        # Edge masks for the two horizontally shifted output chunks
        # (kill the wrap-around columns introduced by the rolls).
        w_idx = jax.lax.broadcasted_iota(jnp.int32, (B, H, W, C), 2)
        not_first_col = w_idx != 0
        not_last_col = w_idx != W - 1

        def conv3x3(t):
            # t: (B, H, W, C) activations in compute dtype.
            # LHS: concatenate the 3 vertical taps.  H is not a tiled axis, so
            # the zero-row padding and the row slices are aligned copies.
            zrow = jnp.zeros((B, 1, W, C), t.dtype)
            tp = jnp.concatenate([zrow, t, zrow], axis=1)          # (B, H+2, W, C)
            lhs = jnp.concatenate([tp[:, dy:dy + H] for dy in range(3)],
                                  axis=-1)                          # (B, H, W, 3C)
            # One deep-K, wide-N MXU matmul: (M, 3C) x (3C, 3C) -> (M, 3C) f32.
            z = jnp.dot(lhs.reshape(M, 3 * C), w,
                        preferred_element_type=jnp.float32)
            z = z.reshape(B, H, W, 3 * C)
            # Combine the 3 horizontal (dx) chunks with XLU sublane rolls +
            # edge masks:  out[h,w] = Z[h,w-1,0:C] + Z[h,w,C:2C] + Z[h,w+1,2C:3C]
            z_l = pltpu.roll(z[..., 0:C], 1, 2)              # Z[w-1] -> position w
            z_c = z[..., C:2 * C]
            z_r = pltpu.roll(z[..., 2 * C:3 * C], W - 1, 2)  # Z[w+1] -> position w
            z_l = jnp.where(not_first_col, z_l, 0.0)
            z_r = jnp.where(not_last_col, z_r, 0.0)
            return z_l + z_c + z_r                           # (B, H, W, C) f32

        y = conv3x3(x.astype(cd))            # conv #1
        y = jnp.maximum(y, 0.0)              # ReLU (f32)
        y = conv3x3(y.astype(cd))            # conv #2 (same weights)
        o_ref[...] = (y * jnp.float32(scale) + x).astype(o_ref.dtype)

    return rb_kernel


# ---------------------------------------------------------------------------
# Sizing helpers
# ---------------------------------------------------------------------------
def _vmem_capacity_bytes():
    try:
        return int(pltpu.get_tpu_info().vmem_capacity_bytes)
    except Exception:                 # conservative fallback (v7x-sized)
        return 64 * 1024 * 1024


def _pick_batch_tile(n, h, w, c, act_itemsize, budget_bytes):
    """Largest divisor of n whose per-step footprint fits the budget, capped at
    n//2 so the 1-D 'parallel' grid has >= 2 steps (v7x has 2 TensorCores)."""
    hwc = h * w * c
    per_img = (
        4 * hwc * 4                     # x-in / out f32 blocks, double-buffered
        + 2 * 3 * hwc * act_itemsize    # two im2col LHS (3C lanes wide)
        + 4 * 3 * hwc * 4               # matmul result + shift/mask temporaries
    )
    bt = max(1, min(n, budget_bytes // max(per_img, 1)))
    if n >= 2:
        bt = min(bt, n // 2)
    bt = max(bt, 1)
    while n % bt:
        bt -= 1
    return int(bt)


def pack_rb_weight(weight_oihw, compute_dtype=jnp.bfloat16):
    """(Cout, Cin, 3, 3) PyTorch OIHW -> (3*Cin, 3*Cout) wide-N packing.

    Row index = dy*Cin + ci, column index = dx*Cout + co.
    Call ONCE at model init (hoisted out of the forward path).
    """
    cout, cin, kh, kw = weight_oihw.shape
    assert (kh, kw) == (3, 3) and cout == cin
    w = jnp.transpose(weight_oihw, (2, 1, 3, 0))        # (dy, ci, dx, co)
    return w.reshape(3 * cin, 3 * cout).astype(compute_dtype)


# ---------------------------------------------------------------------------
# Forward wrappers
# ---------------------------------------------------------------------------
def rb_forward_nhwc(x_nhwc, w_packed, scale=0.1):
    """Fused RB forward on NHWC activations with pre-packed weights."""
    N, H, W, C = x_nhwc.shape
    assert w_packed.shape == (3 * C, 3 * C)
    x_nhwc = x_nhwc.astype(jnp.float32)      # residual path stays f32

    cap = _vmem_capacity_bytes()
    vmem_limit = min(cap - 16 * 1024 * 1024, 96 * 1024 * 1024)   # 48 MiB on v7x
    budget = min(48 * 1024 * 1024, cap // 4)
    bt = _pick_batch_tile(N, H, W, C,
                          jnp.dtype(w_packed.dtype).itemsize, budget)

    kernel = _make_rb_kernel(bt, H, W, C, float(scale))

    flops = 4 * N * H * W * 9 * C * C        # two 3x3 convs, 2 flops per MAC
    bytes_accessed = 2 * N * H * W * C * 4 + w_packed.size * w_packed.dtype.itemsize
    cost = pl.CostEstimate(flops=int(flops), transcendentals=0,
                           bytes_accessed=int(bytes_accessed))

    return pl.pallas_call(
        kernel,
        out_shape=jax.ShapeDtypeStruct((N, H, W, C), jnp.float32),
        grid_spec=pltpu.PrefetchScalarGridSpec(
            num_scalar_prefetch=0,
            grid=(N // bt,),
            in_specs=[
                pl.BlockSpec((bt, H, W, C), lambda n: (n, 0, 0, 0)),
                pl.BlockSpec((3 * C, 3 * C), lambda n: (0, 0)),
            ],
            out_specs=pl.BlockSpec((bt, H, W, C), lambda n: (n, 0, 0, 0)),
        ),
        compiler_params=pltpu.CompilerParams(
            dimension_semantics=("parallel",),
            vmem_limit_bytes=int(vmem_limit)),
        cost_estimate=cost,
    )(x_nhwc, w_packed)


@functools.partial(jax.jit, static_argnames=("scale",))
def rb_forward(x_nchw, w_packed, scale=0.1):
    """PyTorch-interface forward: x (N, 64, H, W) f32, pre-packed weight."""
    x_nhwc = jnp.transpose(x_nchw, (0, 2, 3, 1))
    out_nhwc = rb_forward_nhwc(x_nhwc, w_packed, scale)
    return jnp.transpose(out_nhwc, (0, 3, 1, 2))


# ---------------------------------------------------------------------------
# Pure-JAX reference (mirrors the PyTorch forward)
# ---------------------------------------------------------------------------
def rb_reference(x_nchw, weight_oihw, scale=0.1):
    dn = jax.lax.conv_dimension_numbers(
        x_nchw.shape, weight_oihw.shape, ("NCHW", "OIHW", "NCHW"))

    def conv(v):
        return jax.lax.conv_general_dilated(
            v, weight_oihw, window_strides=(1, 1), padding=((1, 1), (1, 1)),
            dimension_numbers=dn, precision=jax.lax.Precision.HIGHEST)

    y = conv(x_nchw)
    y = jnp.maximum(y, 0.0)
    y = conv(y)
    return y * scale + x_nchw


if __name__ == "__main__":
    key = jax.random.PRNGKey(0)
    k_w, k_x = jax.random.split(key)

    # Module spec: Conv2d(64, 64, kernel_size=3, padding=1, bias=False), C=0.1
    Cch = 64
    N, H, W = 2, 16, 16

    weight = jax.random.normal(k_w, (Cch, Cch, 3, 3), dtype=jnp.float32) * 0.05
    x = jax.random.normal(k_x, (N, Cch, H, W), dtype=jnp.float32)

    ref = jax.block_until_ready(rb_reference(x, weight, scale=0.1))

    # f32 MXU-operand path (numerics check; tolerance allows for TPU matmul
    # pass decomposition differences while still catching structural bugs).
    w_f32 = pack_rb_weight(weight, jnp.float32)
    out_f32 = jax.block_until_ready(rb_forward(x, w_f32, scale=0.1))
    assert out_f32.shape == ref.shape == (N, Cch, H, W)
    err_f32 = float(jnp.max(jnp.abs(out_f32 - ref)))
    assert err_f32 < 3e-2, f"f32 path mismatch vs reference: {err_f32}"

    # Performance path: bf16 MXU operands, f32 accumulation, f32 residual.
    w_bf16 = pack_rb_weight(weight, jnp.bfloat16)
    out_bf16 = jax.block_until_ready(rb_forward(x, w_bf16, scale=0.1))
    err_bf16 = float(jnp.max(jnp.abs(out_bf16 - ref)))
    assert err_bf16 < 5e-2, f"bf16 path mismatch vs reference: {err_bf16}"

    print("KERNEL_OK")
</pallas_src>

<mosaic_0001>
module attributes {stable_mosaic.version = 11 : i64} {
  func.func @rb_kernel(%arg0: i32, %arg1: memref<1x16x16x64xf32, #tpu.memory_space<vmem>>, %arg2: memref<192x192xf32, #tpu.memory_space<vmem>>, %arg3: memref<1x16x16x64xf32, #tpu.memory_space<vmem>>) attributes {dimension_semantics = [#tpu.dimension_semantics<parallel>], iteration_bounds = array<i64: 2>, scalar_prefetch = 0 : i64, scratch_operands = 0 : i64, tpu.core_type = #tpu.core_type<tc>, window_params = [{transform_indices = @transform_0, window_bounds = array<i64: 1, 16, 16, 64>}, {pipeline_mode = #tpu.pipeline_mode<synchronous>, transform_indices = @transform_1, window_bounds = array<i64: 192, 192>}, {transform_indices = @transform_2, window_bounds = array<i64: 1, 16, 16, 64>}]} {
    %c0 = arith.constant 0 : index
    %c0_0 = arith.constant 0 : index
    %c0_1 = arith.constant 0 : index
    %c0_2 = arith.constant 0 : index
    %0 = vector.load %arg1[%c0, %c0_0, %c0_1, %c0_2] : memref<1x16x16x64xf32, #tpu.memory_space<vmem>>, vector<1x16x16x64xf32>
    %c0_3 = arith.constant 0 : index
    %c0_4 = arith.constant 0 : index
    %1 = vector.load %arg2[%c0_3, %c0_4] : memref<192x192xf32, #tpu.memory_space<vmem>>, vector<192x192xf32>
    %2 = tpu.iota {dimensions = array<i32: 2>} : vector<1x16x16x64xi32>
    %c0_i32 = arith.constant 0 : i32
    %3 = vector.broadcast %c0_i32 : i32 to vector<1x16x16x64xi32>
    %4 = arith.cmpi ne, %2, %3 : vector<1x16x16x64xi32>
    %c15_i32 = arith.constant 15 : i32
    %5 = vector.broadcast %c15_i32 : i32 to vector<1x16x16x64xi32>
    %6 = arith.cmpi ne, %2, %5 : vector<1x16x16x64xi32>
    %cst = arith.constant 0.000000e+00 : f32
    %7 = vector.broadcast %cst : f32 to vector<1x1x16x64xf32>
    %8 = tpu.concatenate %7, %0, %7 in 1 : vector<1x1x16x64xf32>, vector<1x16x16x64xf32>, vector<1x1x16x64xf32> -> vector<1x18x16x64xf32>
    %9 = vector.extract_strided_slice %8 {offsets = [0, 0, 0, 0], sizes = [1, 16, 16, 64], strides = [1, 1, 1, 1]} : vector<1x18x16x64xf32> to vector<1x16x16x64xf32>
    %10 = vector.extract_strided_slice %8 {offsets = [0, 1, 0, 0], sizes = [1, 16, 16, 64], strides = [1, 1, 1, 1]} : vector<1x18x16x64xf32> to vector<1x16x16x64xf32>
    %11 = vector.extract_strided_slice %8 {offsets = [0, 2, 0, 0], sizes = [1, 16, 16, 64], strides = [1, 1, 1, 1]} : vector<1x18x16x64xf32> to vector<1x16x16x64xf32>
    %12 = tpu.concatenate %9, %10, %11 in 3 : vector<1x16x16x64xf32>, vector<1x16x16x64xf32>, vector<1x16x16x64xf32> -> vector<1x16x16x192xf32>
    %13 = vector.shape_cast %12 : vector<1x16x16x192xf32> to vector<256x192xf32>
    %cst_5 = arith.constant dense<0.000000e+00> : vector<256x192xf32>
    %14 = tpu.matmul %13, %1, %cst_5 {dimension_numbers = #tpu.dot_dimension_numbers<[1], [0], [0], [1], [0, 0, 1, 1], [], []>} : vector<256x192xf32>, vector<192x192xf32>, vector<256x192xf32> -> vector<256x192xf32>
    %15 = vector.shape_cast %14 : vector<256x192xf32> to vector<1x16x16x192xf32>
    %16 = vector.extract_strided_slice %15 {offsets = [0, 0, 0, 0], sizes = [1, 16, 16, 64], strides = [1, 1, 1, 1]} : vector<1x16x16x192xf32> to vector<1x16x16x64xf32>
    %c1_i32 = arith.constant 1 : i32
    %17 = tpu.dynamic_rotate %16 by %c1_i32 dim 2 : vector<1x16x16x64xf32>, i32 -> vector<1x16x16x64xf32>
    %18 = vector.extract_strided_slice %15 {offsets = [0, 0, 0, 64], sizes = [1, 16, 16, 64], strides = [1, 1, 1, 1]} : vector<1x16x16x192xf32> to vector<1x16x16x64xf32>
    %19 = vector.extract_strided_slice %15 {offsets = [0, 0, 0, 128], sizes = [1, 16, 16, 64], strides = [1, 1, 1, 1]} : vector<1x16x16x192xf32> to vector<1x16x16x64xf32>
    %c15_i32_6 = arith.constant 15 : i32
    %20 = tpu.dynamic_rotate %19 by %c15_i32_6 dim 2 : vector<1x16x16x64xf32>, i32 -> vector<1x16x16x64xf32>
    %cst_7 = arith.constant 0.000000e+00 : f32
    %21 = vector.broadcast %cst_7 : f32 to vector<1x16x16x64xf32>
    %22 = arith.select %4, %17, %21 : vector<1x16x16x64xi1>, vector<1x16x16x64xf32>
    %cst_8 = arith.constant 0.000000e+00 : f32
    %23 = vector.broadcast %cst_8 : f32 to vector<1x16x16x64xf32>
    %24 = arith.select %6, %20, %23 : vector<1x16x16x64xi1>, vector<1x16x16x64xf32>
    %25 = arith.addf %22, %18 : vector<1x16x16x64xf32>
    %26 = arith.addf %25, %24 : vector<1x16x16x64xf32>
    %cst_9 = arith.constant 0.000000e+00 : f32
    %27 = vector.broadcast %cst_9 : f32 to vector<1x16x16x64xf32>
    %28 = arith.maximumf %26, %27 : vector<1x16x16x64xf32>
    %cst_10 = arith.constant 0.000000e+00 : f32
    %29 = vector.broadcast %cst_10 : f32 to vector<1x1x16x64xf32>
    %30 = tpu.concatenate %29, %28, %29 in 1 : vector<1x1x16x64xf32>, vector<1x16x16x64xf32>, vector<1x1x16x64xf32> -> vector<1x18x16x64xf32>
    %31 = vector.extract_strided_slice %30 {offsets = [0, 0, 0, 0], sizes = [1, 16, 16, 64], strides = [1, 1, 1, 1]} : vector<1x18x16x64xf32> to vector<1x16x16x64xf32>
    %32 = vector.extract_strided_slice %30 {offsets = [0, 1, 0, 0], sizes = [1, 16, 16, 64], strides = [1, 1, 1, 1]} : vector<1x18x16x64xf32> to vector<1x16x16x64xf32>
    %33 = vector.extract_strided_slice %30 {offsets = [0, 2, 0, 0], sizes = [1, 16, 16, 64], strides = [1, 1, 1, 1]} : vector<1x18x16x64xf32> to vector<1x16x16x64xf32>
    %34 = tpu.concatenate %31, %32, %33 in 3 : vector<1x16x16x64xf32>, vector<1x16x16x64xf32>, vector<1x16x16x64xf32> -> vector<1x16x16x192xf32>
    %35 = vector.shape_cast %34 : vector<1x16x16x192xf32> to vector<256x192xf32>
    %cst_11 = arith.constant dense<0.000000e+00> : vector<256x192xf32>
    %36 = tpu.matmul %35, %1, %cst_11 {dimension_numbers = #tpu.dot_dimension_numbers<[1], [0], [0], [1], [0, 0, 1, 1], [], []>} : vector<256x192xf32>, vector<192x192xf32>, vector<256x192xf32> -> vector<256x192xf32>
    %37 = vector.shape_cast %36 : vector<256x192xf32> to vector<1x16x16x192xf32>
    %38 = vector.extract_strided_slice %37 {offsets = [0, 0, 0, 0], sizes = [1, 16, 16, 64], strides = [1, 1, 1, 1]} : vector<1x16x16x192xf32> to vector<1x16x16x64xf32>
    %c1_i32_12 = arith.constant 1 : i32
    %39 = tpu.dynamic_rotate %38 by %c1_i32_12 dim 2 : vector<1x16x16x64xf32>, i32 -> vector<1x16x16x64xf32>
    %40 = vector.extract_strided_slice %37 {offsets = [0, 0, 0, 64], sizes = [1, 16, 16, 64], strides = [1, 1, 1, 1]} : vector<1x16x16x192xf32> to vector<1x16x16x64xf32>
    %41 = vector.extract_strided_slice %37 {offsets = [0, 0, 0, 128], sizes = [1, 16, 16, 64], strides = [1, 1, 1, 1]} : vector<1x16x16x192xf32> to vector<1x16x16x64xf32>
    %c15_i32_13 = arith.constant 15 : i32
    %42 = tpu.dynamic_rotate %41 by %c15_i32_13 dim 2 : vector<1x16x16x64xf32>, i32 -> vector<1x16x16x64xf32>
    %cst_14 = arith.constant 0.000000e+00 : f32
    %43 = vector.broadcast %cst_14 : f32 to vector<1x16x16x64xf32>
    %44 = arith.select %4, %39, %43 : vector<1x16x16x64xi1>, vector<1x16x16x64xf32>
    %cst_15 = arith.constant 0.000000e+00 : f32
    %45 = vector.broadcast %cst_15 : f32 to vector<1x16x16x64xf32>
    %46 = arith.select %6, %42, %45 : vector<1x16x16x64xi1>, vector<1x16x16x64xf32>
    %47 = arith.addf %44, %40 : vector<1x16x16x64xf32>
    %48 = arith.addf %47, %46 : vector<1x16x16x64xf32>
    %cst_16 = arith.constant 1.000000e-01 : f32
    %49 = vector.broadcast %cst_16 : f32 to vector<1x16x16x64xf32>
    %50 = arith.mulf %48, %49 : vector<1x16x16x64xf32>
    %51 = arith.addf %50, %0 : vector<1x16x16x64xf32>
    %c0_17 = arith.constant 0 : index
    %c0_18 = arith.constant 0 : index
    %c0_19 = arith.constant 0 : index
    %c0_20 = arith.constant 0 : index
    %52 = vector.load %arg3[%c0_17, %c0_18, %c0_19, %c0_20] : memref<1x16x16x64xf32, #tpu.memory_space<vmem>>, vector<1x16x16x64xf32>
    tpu.vector_store %arg3[%c0_17, %c0_18, %c0_19, %c0_20], %51 {strides = array<i32>} : memref<1x16x16x64xf32, #tpu.memory_space<vmem>>, vector<1x16x16x64xf32>,
    return
  }
  func.func @transform_0(%arg0: i32) -> (i32, i32, i32, i32) {
    %c0_i32 = arith.constant 0 : i32
    %c0_i32_0 = arith.constant 0 : i32
    %c0_i32_1 = arith.constant 0 : i32
    %c0_i32_2 = arith.constant 0 : i32
    return %arg0, %c0_i32, %c0_i32_0, %c0_i32_1 : i32, i32, i32, i32
  }
  func.func @transform_1(%arg0: i32) -> (i32, i32) {
    %c0_i32 = arith.constant 0 : i32
    %c0_i32_0 = arith.constant 0 : i32
    %c0_i32_1 = arith.constant 0 : i32
    return %c0_i32, %c0_i32_0 : i32, i32
  }
  func.func @transform_2(%arg0: i32) -> (i32, i32, i32, i32) {
    %c0_i32 = arith.constant 0 : i32
    %c0_i32_0 = arith.constant 0 : i32
    %c0_i32_1 = arith.constant 0 : i32
    %c0_i32_2 = arith.constant 0 : i32
    return %arg0, %c0_i32, %c0_i32_0, %c0_i32_1 : i32, i32, i32, i32
  }
}

</mosaic_0001>

<bundles_post_ra>
// kernel: rb_forward.1
= control target key start
LH: loop header
LB: loop body
LE: loop exit
PB: predicated region body
PF: predicated region fallthrough
CT: control target
= control target key end

     0   :  { %7 = vsyncpa [#allocation3], 0  ;;  %s4224_s0 = inlined_call_operand.hbm [shape: f32[2,16,16,64], index: 0, kind: input, shape index: {}]   ;;  %s4225_s1 = inlined_call_operand.hbm [shape: f32[192,192], index: 1, kind: input, shape index: {}]   ;;  %s4226_s2 = inlined_call_operand.hbm [shape: f32[2,16,16,64], index: 2, kind: output, shape index: {}]  }
   0x1   :  { %9 = vsyncpa [#allocation3 + $0x1], 0 }
   0x2   :  { %10 = vsyncpa [#allocation6], 0 }
   0x3   :  { %11 = vsyncpa [#allocation4], 0 }
   0x4   :  { %13 = vsyncpa [#allocation4 + $0x1], 0  ;;  %s2550_s9 = smov 0   ;;  %s2552_s10 = smov 0  }
   0x5   :  { %s2554_s11 = smov 0   ;;  %s2556_s12 = smov 0  }
   0x6 LB: > { %s2571_s13 = sadd.s32 4294967295, %s2522_s12   ;;  %s2217_s14 = sadd.s32 4294967294, %s2522_s12   ;;  %s2522_s12 = sphi %s2556_s12, %s4293_s12   ;;  %s2518_s11 = sphi %s2554_s11, %s4292_s11   ;;  %s2514_s10 = sphi %s2552_s10, %s4291_s10   ;;  %s2510_s9 = sphi %s2550_s9, %s4290_s9  }
   0x7   : > { %p39_p0 = scmp.ne.s32.totalorder %s2514_s10, %s2510_s9  ;;  %p4227_p1 = scmp.eq.s32.totalorder %s2571_s13, 0 }
   0x8   : > { %p90_p3 = scmp.eq.s32.totalorder %s2217_s14, 1  ;;  %p2218_p5 = scmp.ge.s32.totalorder %s2522_s12, 1 }
   0x9   : > { %p2580_p4 = por %p4227_p1, %p39_p0  ;;  %p97_p7 = scmp.lt.s32.totalorder %s2522_s12, 3 }
   0xa   : > { %p2585_p6 = por %p90_p3, %p39_p0  ;;  %s2524_s18 = smov [#allocation5]  }
   0xb   : > { %s4235_s15 = scalar_select %p2580_p4, 1, 0 }
   0xc   : > { %s4236_s16 = scalar_select %p2585_p6, 1, 0 }
   0xd   : > { %p2590_p8 = pnand %p2218_p5, %p97_p7  ;;  %s109_s19 = sshll.u32 %s2524_s18, 4  ;;  %s110_s19 = int_to_ptr.vmem [resolvable:$true] %s109_s19 }
   0xe   : > { %s2604_s21 = sadd.s32 1, %s2522_s12   ;;  %s26_s22 = sadd.s32 1, %s2518_s11 }
   0xf   : > { %s4237_s17 = scalar_select %p2590_p8, 1, 0 }
  0x10   : > { %p2311_p9 = pneg %p2590_p8  ;;  %s23_s23 = ssub.s32 %s2522_s12, %s2604_s21 }
  0x11   : > { %s2411_s24 = scalar_lea.vmem %s110_s19, 6144  ;;  %p2419_p5 = scmp.lt.s32.totalorder %s110_s19, %s110_s19 }
  0x12   : > { %p2599_p11 = pnand %p2311_p9, %p4227_p1  ;;  %p2412_p13 = scmp.ne.s32.totalorder %s110_s19, %s2411_s24 }
  0x13   : > { %p2420_p7 = scmp.lt.s32.totalorder %s2411_s24, %s2411_s24 }
  0x14   : > { %p2402_p12 = pneg %p2599_p11 }
  0x15   : > { %p2421_p10 = por %p2420_p7, %p2419_p5 }
  0x16   : > { %p2414_p0 = pnand %p2412_p13, %p2402_p12 }
  0x18   : > { %p2415_p3 = pneg %p2414_p0 }
  0x1a   : > { %p2422_p2 = pnand %p2421_p10, %p2415_p3 }
  0x1c   : > { %2425 = shalt.err (!%p2422_p2)
}
  0x1d   : > { %s2525_s25 = smov 256   ;;  %s2526_s26 = smov 16  }
  0x1e   : > { %2314 = dma.hbm_to_vmem [thread:$0]  (!%p2599_p11), %s4225_s1, 6144, %s110_s19, [#allocation6], %s2525_s25, %s2525_s25, %s2526_s26  }
  0x1f   : > { %p24_p9 = scmp.eq.s32.totalorder %s23_s23, 0  ;;  %p33_p12 = scmp.ne.s32.totalorder %s2518_s11, %s2514_s10 }
  0x20   : > { %p34_p10 = scmp.eq.s32.totalorder %s2522_s12, 0  ;;  %p2324_p2 = scmp.lt.s32.totalorder %s2522_s12, 2 }
  0x21   : > { %s2621_s29 = scalar_select %p24_p9, %s2518_s11, %s26_s22  }
  0x22   : > { %p35_p13 = por %p34_p10, %p33_p12  ;;  %p4239_p0 = scmp.eq.s32.totalorder %s2571_s13, 1 }
  0x23   : > { %s123_s3 = sand.u32 1, %s2518_s11   ;;  %s2301_s4 = sshll.u32 %s2522_s12, 12 }
  0x24   : > { %p2625_p3 = por %p4239_p0, %p33_p12  ;;  %s2221_s5 = sshll.u32 %s123_s3, 8 }
  0x25   : > { %s2634_s8 = scalar_lea.hbm %s4224_s0, %s2301_s4  ;;  %s127_s14 = scalar_lea.vmem [#allocation2], %s2221_s5 }
  0x26   : > { %s4240_s30 = scalar_select %p2625_p3, 1, 0 }
  0x27   : > { %s134_s18 = sshll.u32 %s127_s14, 4  ;;  %p2636_p11 = pnand %p2324_p2, %p35_p13  ;;  %s2640_s18 = int_to_ptr.vmem [resolvable:$true] %s134_s18 }
  0x28   : > { %s2642_s20 = scalar_lea.sflag [#allocation3], %s123_s3  ;;  %s2426_s22 = scalar_lea.hbm %s2634_s8, 4096 }
  0x29   : > { %p2427_p5 = scmp.ne.s32.totalorder %s2634_s8, %s2426_s22  ;;  %p2428_p7 = pneg %p2636_p11 }
  0x2a   : > { %s2431_s25 = scalar_lea.hbm %s4224_s0, 8192  ;;  %p2432_p10 = scmp.lt.s32.totalorder %s2634_s8, %s4224_s0 }
  0x2b   : > { %p2429_p9 = pnand %p2428_p7, %p2427_p5  ;;  %p2433_p2 = scmp.lt.s32.totalorder %s2431_s25, %s2426_s22 }
  0x2d   : > { %p2430_p12 = pneg %p2429_p9  ;;  %p2434_p13 = por %p2433_p2, %p2432_p10 }
  0x2f   : > { %p2435_p0 = pnand %p2434_p13, %p2430_p12 }
  0x31   : > { %2438 = shalt.err (!%p2435_p0)
}
  0x32   : > { %s2439_s28 = scalar_lea.vmem %s2640_s18, 4096  ;;  %s2527_s3 = smov [#allocation2]  }
  0x33   : > { %p2440_p1 = scmp.ne.s32.totalorder %s2640_s18, %s2439_s28  ;;  %s2444_s4 = sshll.u32 %s2527_s3, 4  ;;  %s2445_s4 = int_to_ptr.vmem [resolvable:$false] %s2444_s4 }
  0x34   : > { %s2446_s5 = scalar_lea.vmem %s2445_s4, 8192  ;;  %p2447_p9 = scmp.lt.s32.totalorder %s2640_s18, %s2445_s4 }
  0x35   : > { %p2442_p6 = pnand %p2440_p1, %p2428_p7  ;;  %p2448_p3 = scmp.lt.s32.totalorder %s2446_s5, %s2439_s28 }
  0x37   : > { %p2443_p5 = pneg %p2442_p6  ;;  %p2449_p4 = por %p2448_p3, %p2447_p9 }
  0x39   : > { %p2450_p8 = pnand %p2449_p4, %p2443_p5 }
  0x3b   : > { %2453 = shalt.err (!%p2450_p8)
}
  0x3c   : > { %s2528_s6 = smov 128   ;;  %s2529_s7 = smov 8  }
  0x3d   : > { %2318 = dma.hbm_to_vmem [thread:$0]  (!%p2636_p11), %s2634_s8, 4096, %s2640_s18, %s2642_s20, %s2528_s6, %s2528_s6, %s2529_s7  }
  0x3e   : > { %p4242_p1 = scmp.ne.s32.totalorder %s4237_s17, 0 }
  0x40   : > { %146 = sbr.rel (%p4242_p1) target bundleno = 1076 (0x434), region = 28 }
  0x45   : > { %s2666_s14 = sand.u32 1, %s2514_s10   ;;  %p4243_p4 = scmp.ne.s32.totalorder %s4235_s15, 0 }
  0x46   : > { %s2225_s22 = sshll.u32 %s2666_s14, 8  ;;  %s149_s23 = scalar_lea.sflag [#allocation3], %s2666_s14 }
  0x47   : > { %s2672_s24 = scalar_lea.vmem [#allocation2], %s2225_s22 }
  0x48   : > { %2497 = dma.done.wait (%p4243_p4), %s149_s23, 4096  }
  0x49   : > { %2499 = vsyncadd (%p4243_p4), %s149_s23, 4294963200  ;;  %p4244_p6 = scmp.eq.s32.totalorder %s2571_s13, 0 }
  0x4b   : > { %2501 = dma.done.wait (%p4244_p6), [#allocation6], 6144   ;;  %p4245_p8 = pmov %p4244_p6 }
  0x4c   : > { %vm392_vm0 = vcmask 523264   ;;  %v2683_v0 = vld [vmem:[%s2672_s24] sm:$0xff]  ;;  %v2686_v1 = vld [vmem:[%s2672_s24 + $0x10] sm:$0xff]  ;;  %s2530_s17 = smov 64   ;;  %v240_v2 = vld [vmem:[#allocation5 + $0xf8] sm:$0xff]  ;;  %s3945_s15 = scalar_lea.vmem [#allocation7], %s2225_s22 }
  0x4d   : > { %2503 = vsyncadd (%p4245_p8), [#allocation6], 4294961152  ;;  %296 = vrot.lane.b32.xlu0 %v2683_v0, %s2530_s17  ;;  %300 = vrot.lane.b32.xlu1 %v2686_v1, %s2530_s17  ;;  %v2693_v3 = vld [vmem:[%s2672_s24 + $0x8] sm:$0xff]  ;;  %v2696_v4 = vld [vmem:[%s2672_s24 + $0x18] sm:$0xff]  ;;  %s2302_s8 = sshll.u32 %s2571_s13, 12  ;;  %s2134_s18 = sshll.u32 %s3945_s15, 4  ;;  %s4178_s18 = int_to_ptr.vmem [resolvable:$true] %s2134_s18 }
  0x4e   : > { %488 = vmatprep.subr.mxu0 %v240_v2  ;;  %2228 = vmatprep.mubr.msk.f32.mxu0 %vm392_vm0, %v2686_v1  ;;  %v239_v5 = vld [vmem:[#allocation5 + $0xf0] sm:$0xff]  ;;  %v2705_v6 = vld [vmem:[%s2672_s24 + $0x20] sm:$0xff]  ;;  %v2708_v7 = vld [vmem:[%s2672_s24 + $0x28] sm:$0xff]  ;;  %s4176_s25 = scalar_lea.hbm %s4226_s2, %s2302_s8  ;;  %s2121_s26 = scalar_lea.sflag [#allocation4], %s2666_s14 }
  0x4f   : > { %1383 = vmatprep.subr.mxu1 %v240_v2  ;;  %489 = vmatpush1.msra.mxu0 %v239_v5  ;;  %v238_v8 = vld [vmem:[#allocation5 + $0xe8] sm:$0xff]  ;;  %v237_v9 = vld [vmem:[#allocation5 + $0xe0] sm:$0xff]  ;;  %v236_v10 = vld [vmem:[#allocation5 + $0xd8] sm:$0xff]  ;;  %s2454_s13 = scalar_lea.vmem %s4178_s18, 4096  ;;  %p4287_p11 = scmp.ne.s32.totalorder %s4240_s30, 0 }
  0x50   : > { %1384 = vmatpush1.msra.mxu1 %v239_v5  ;;  %490 = vmatprep.subr.mxu0 %v238_v8  ;;  %v235_v11 = vld [vmem:[#allocation5 + $0xd0] sm:$0xff]  ;;  %v234_v12 = vld [vmem:[#allocation5 + $0xc8] sm:$0xff]  ;;  %v2718_v14 = vld [vmem:[%s2672_s24 + $0x38] sm:$0xff]  ;;  %p2455_p3 = scmp.ne.s32.totalorder %s4178_s18, %s2454_s13  ;;  %s2532_s27 = smov [#allocation7]  }
  0x51   : > { %298 = vrot.lane.b32.xlu0 %v2693_v3, %s2530_s17  ;;  %302 = vrot.lane.b32.xlu1 %v2696_v4, %s2530_s17  ;;  %v2715_v13 = vld [vmem:[%s2672_s24 + $0x30] sm:$0xff]  ;;  %v233_v15 = vld [vmem:[#allocation5 + $0xc0] sm:$0xff]  ;;  %v232_v16 = vld [vmem:[#allocation5 + $0xb8] sm:$0xff]  ;;  %s2458_s28 = sshll.u32 %s2532_s27, 4  ;;  %s2459_s28 = int_to_ptr.vmem [resolvable:$false] %s2458_s28 }
  0x52   : > { %1385 = vmatprep.subr.mxu1 %v238_v8  ;;  %491 = vmatpush1.msra.mxu0 %v237_v9  ;;  %v231_v17 = vld [vmem:[#allocation5 + $0xb0] sm:$0xff]  ;;  %v2725_v18 = vld [vmem:[%s2672_s24 + $0x40] sm:$0xff]  ;;  %v2728_v19 = vld [vmem:[%s2672_s24 + $0x48] sm:$0xff]  ;;  %p2456_p7 = pnand %p2455_p3, %p4287_p11  ;;  %s2460_s3 = scalar_lea.vmem %s2459_s28, 8192 }
  0x53   : > { %1386 = vmatpush1.msra.mxu1 %v237_v9  ;;  %492 = vmatprep.subr.mxu0 %v236_v10  ;;  %v230_v20 = vld [vmem:[#allocation5 + $0xa8] sm:$0xff]  ;;  %v229_v21 = vld [vmem:[#allocation5 + $0xa0] sm:$0xff]  ;;  %v228_v22 = vld [vmem:[#allocation5 + $0x98] sm:$0xff]  ;;  %p2461_p10 = scmp.lt.s32.totalorder %s4178_s18, %s2459_s28  ;;  %p2462_p2 = scmp.lt.s32.totalorder %s2460_s3, %s2454_s13 }
  0x54   : > { %1387 = vmatprep.subr.mxu1 %v236_v10  ;;  %493 = vmatpush1.msra.mxu0 %v235_v11  ;;  %v2735_v23 = vld [vmem:[%s2672_s24 + $0x50] sm:$0xff]  ;;  %v2738_v24 = vld [vmem:[%s2672_s24 + $0x58] sm:$0xff]  ;;  %v226_v26 = vld [vmem:[#allocation5 + $0x88] sm:$0xff]  ;;  %p2457_p12 = pneg %p2456_p7 }
  0x55   : > { %304 = vrot.lane.b32.xlu0 %v2705_v6, %s2530_s17  ;;  %306 = vrot.lane.b32.xlu1 %v2708_v7, %s2530_s17  ;;  %v227_v25 = vld [vmem:[#allocation5 + $0x90] sm:$0xff]  ;;  %v225_v27 = vld [vmem:[#allocation5 + $0x80] sm:$0xff]  ;;  %v2748_v29 = vld [vmem:[%s2672_s24 + $0x68] sm:$0xff]  ;;  %p2463_p13 = por %p2462_p2, %p2461_p10 }
  0x56   : > { %1388 = vmatpush1.msra.mxu1 %v235_v11  ;;  %494 = vmatprep.subr.mxu0 %v234_v12  ;;  %v2745_v28 = vld [vmem:[%s2672_s24 + $0x60] sm:$0xff]  ;;  %v224_v30 = vld [vmem:[#allocation5 + $0x78] sm:$0xff]  ;;  %v223_v31 = vld [vmem:[#allocation5 + $0x70] sm:$0xff] }
  0x57   : > { %1389 = vmatprep.subr.mxu1 %v234_v12  ;;  %495 = vmatpush1.msra.mxu0 %v233_v15  ;;  %v222_v32 = vld [vmem:[#allocation5 + $0x68] sm:$0xff]  ;;  %v2755_v33 = vld [vmem:[%s2672_s24 + $0x70] sm:$0xff]  ;;  %v2758_v34 = vld [vmem:[%s2672_s24 + $0x78] sm:$0xff]  ;;  %p2464_p0 = pnand %p2463_p13, %p2457_p12 }
  0x58   : > { %1390 = vmatpush1.msra.mxu1 %v233_v15  ;;  %496 = vmatprep.subr.mxu0 %v232_v16  ;;  %v221_v35 = vld [vmem:[#allocation5 + $0x60] sm:$0xff]  ;;  %v220_v36 = vld [vmem:[#allocation5 + $0x58] sm:$0xff]  ;;  %v219_v37 = vld [vmem:[#allocation5 + $0x50] sm:$0xff] }
  0x59   : > { %308 = vrot.lane.b32.xlu0 %v2715_v13, %s2530_s17  ;;  %310 = vrot.lane.b32.xlu1 %v2718_v14, %s2530_s17  ;;  %v2765_v38 = vld [vmem:[%s2672_s24 + $0x80] sm:$0xff]  ;;  %v2768_v39 = vld [vmem:[%s2672_s24 + $0x88] sm:$0xff]  ;;  %v216_v42 = vld [vmem:[#allocation5 + $0x38] sm:$0xff] }
  0x5a   : > { %1391 = vmatprep.subr.mxu1 %v232_v16  ;;  %497 = vmatpush1.msra.mxu0 %v231_v17  ;;  %v218_v40 = vld [vmem:[#allocation5 + $0x48] sm:$0xff]  ;;  %v217_v41 = vld [vmem:[#allocation5 + $0x40] sm:$0xff]  ;;  %v2775_v43 = vld [vmem:[%s2672_s24 + $0x90] sm:$0xff] }
  0x5b   : > { %1392 = vmatpush1.msra.mxu1 %v231_v17  ;;  %498 = vmatprep.subr.mxu0 %v230_v20  ;;  %v2778_v44 = vld [vmem:[%s2672_s24 + $0x98] sm:$0xff]  ;;  %v215_v45 = vld [vmem:[#allocation5 + $0x30] sm:$0xff]  ;;  %v214_v46 = vld [vmem:[#allocation5 + $0x28] sm:$0xff] }
  0x5c   : > { %1393 = vmatprep.subr.mxu1 %v230_v20  ;;  %499 = vmatpush1.msra.mxu0 %v229_v21  ;;  %v213_v47 = vld [vmem:[#allocation5 + $0x20] sm:$0xff]  ;;  %v2788_v49 = vld [vmem:[%s2672_s24 + $0xa8] sm:$0xff]  ;;  %v212_v50 = vld [vmem:[#allocation5 + $0x18] sm:$0xff] }
  0x5d   : > { %312 = vrot.lane.b32.xlu0 %v2725_v18, %s2530_s17  ;;  %314 = vrot.lane.b32.xlu1 %v2728_v19, %s2530_s17  ;;  %v2785_v48 = vld [vmem:[%s2672_s24 + $0xa0] sm:$0xff]  ;;  %v211_v51 = vld [vmem:[#allocation5 + $0x10] sm:$0xff]  ;;  %v210_v52 = vld [vmem:[#allocation5 + $0x8] sm:$0xff] }
  0x5e   : > { %1394 = vmatpush1.msra.mxu1 %v229_v21  ;;  %500 = vmatprep.subr.mxu0 %v228_v22  ;;  %v2795_v53 = vld [vmem:[%s2672_s24 + $0xb0] sm:$0xff]  ;;  %v2798_v54 = vld [vmem:[%s2672_s24 + $0xb8] sm:$0xff]  ;;  %v209_v55 = vld [vmem:[#allocation5] sm:$0xff] }
  0x5f   : > { %1395 = vmatprep.subr.mxu1 %v228_v22  ;;  %501 = vmatpush1.msra.mxu0 %v227_v25  ;;  %v256_v56 = vld [vmem:[#allocation5 + $0x178] sm:$0xff]  ;;  %v255_v57 = vld [vmem:[#allocation5 + $0x170] sm:$0xff]  ;;  %v2805_v58 = vld [vmem:[%s2672_s24 + $0xc0] sm:$0xff] }
  0x60   : > { %1396 = vmatpush1.msra.mxu1 %v227_v25  ;;  %502 = vmatprep.subr.mxu0 %v226_v26  ;;  %v2808_v59 = vld [vmem:[%s2672_s24 + $0xc8] sm:$0xff]  ;;  %v253_v61 = vld [vmem:[#allocation5 + $0x160] sm:$0xff]  ;;  %v252_v62 = vld [vmem:[#allocation5 + $0x158] sm:$0xff] }
  0x61   : > { %316 = vrot.lane.b32.xlu0 %v2735_v23, %s2530_s17  ;;  %318 = vrot.lane.b32.xlu1 %v2738_v24, %s2530_s17  ;;  %v254_v60 = vld [vmem:[#allocation5 + $0x168] sm:$0xff]  ;;  %v2815_v63 = vld [vmem:[%s2672_s24 + $0xd0] sm:$0xff]  ;;  %v2818_v8 = vld [vmem:[%s2672_s24 + $0xd8] sm:$0xff] }
  0x62   : > { %1397 = vmatprep.subr.mxu1 %v226_v26  ;;  %503 = vmatpush1.msra.mxu0 %v225_v27  ;;  %v251_v2 = vld [vmem:[#allocation5 + $0x150] sm:$0xff]  ;;  %v250_v5 = vld [vmem:[#allocation5 + $0x148] sm:$0xff]  ;;  %v249_v9 = vld [vmem:[#allocation5 + $0x140] sm:$0xff] }
  0x63   : > { %1398 = vmatpush1.msra.mxu1 %v225_v27  ;;  %504 = vmatprep.subr.mxu0 %v224_v30  ;;  %v248_v10 = vld [vmem:[#allocation5 + $0x138] sm:$0xff]  ;;  %v247_v11 = vld [vmem:[#allocation5 + $0x130] sm:$0xff]  ;;  %v2825_v12 = vld [vmem:[%s2672_s24 + $0xe0] sm:$0xff] }
  0x64   : > { %1399 = vmatprep.subr.mxu1 %v224_v30  ;;  %505 = vmatpush1.msra.mxu0 %v223_v31  ;;  %v246_v15 = vld [vmem:[#allocation5 + $0x128] sm:$0xff]  ;;  %v245_v17 = vld [vmem:[#allocation5 + $0x120] sm:$0xff]  ;;  %v244_v20 = vld [vmem:[#allocation5 + $0x118] sm:$0xff]  ;;  %v4246_v30 = vmov 0 }
  0x65   : > { %320 = vrot.lane.b32.xlu0 %v2745_v28, %s2530_s17  ;;  %322 = vrot.lane.b32.xlu1 %v2748_v29, %s2530_s17  ;;  %v2828_v16 = vld [vmem:[%s2672_s24 + $0xe8] sm:$0xff]  ;;  %v243_v21 = vld [vmem:[#allocation5 + $0x110] sm:$0xff]  ;;  %v2838_v26 = vld [vmem:[%s2672_s24 + $0xf8] sm:$0xff] }
  0x66   : > { %1400 = vmatpush1.msra.mxu1 %v223_v31  ;;  %506 = vmatprep.subr.mxu0 %v222_v32  ;;  %v2835_v22 = vld [vmem:[%s2672_s24 + $0xf0] sm:$0xff]  ;;  %v242_v25 = vld [vmem:[#allocation5 + $0x108] sm:$0xff]  ;;  %v241_v27 = vld [vmem:[#allocation5 + $0x100] sm:$0xff] }
  0x67   : > { %1401 = vmatprep.subr.mxu1 %v222_v32  ;;  %507 = vmatpush1.msra.mxu0 %v221_v35  ;;  %vm2845_vm1 = vmneg %vm392_vm0 }
  0x68   : > { %1402 = vmatpush1.msra.mxu1 %v221_v35  ;;  %508 = vmatprep.subr.mxu0 %v220_v36  ;;  %v4247_v30 = vsel %vm2845_vm1, 4294967295, %v4246_v30 }
  0x69   : > { %324 = vrot.lane.b32.xlu0 %v2755_v33, %s2530_s17  ;;  %326 = vrot.lane.b32.xlu1 %v2758_v34, %s2530_s17  ;;  %4248 = vst [vmem:[#allocation11_spill] sm:$0xff] %v4247_v30 }
  0x6a   : > { %1403 = vmatprep.subr.mxu1 %v220_v36  ;;  %509 = vmatpush1.msra.mxu0 %v219_v37 }
  0x6b   : > { %1404 = vmatpush1.msra.mxu1 %v219_v37  ;;  %510 = vmatprep.subr.mxu0 %v218_v40 }
  0x6c   : > { %1405 = vmatprep.subr.mxu1 %v218_v40  ;;  %511 = vmatpush1.msra.mxu0 %v217_v41 }
  0x6d   : > { %328 = vrot.lane.b32.xlu0 %v2765_v38, %s2530_s17  ;;  %330 = vrot.lane.b32.xlu1 %v2768_v39, %s2530_s17 }
  0x6e   : > { %1406 = vmatpush1.msra.mxu1 %v217_v41  ;;  %512 = vmatprep.subr.mxu0 %v216_v42 }
  0x6f   : > { %1407 = vmatprep.subr.mxu1 %v216_v42  ;;  %513 = vmatpush1.msra.mxu0 %v215_v45 }
  0x70   : > { %1408 = vmatpush1.msra.mxu1 %v215_v45  ;;  %514 = vmatprep.subr.mxu0 %v214_v46 }
  0x71   : > { %332 = vrot.lane.b32.xlu0 %v2775_v43, %s2530_s17  ;;  %334 = vrot.lane.b32.xlu1 %v2778_v44, %s2530_s17 }
  0x72   : > { %1409 = vmatprep.subr.mxu1 %v214_v46  ;;  %515 = vmatpush1.msra.mxu0 %v213_v47 }
  0x73   : > { %1410 = vmatpush1.msra.mxu1 %v213_v47  ;;  %516 = vmatprep.subr.mxu0 %v212_v50 }
  0x74   : > { %1411 = vmatprep.subr.mxu1 %v212_v50  ;;  %517 = vmatpush1.msra.mxu0 %v211_v51 }
  0x75   : > { %336 = vrot.lane.b32.xlu0 %v2785_v48, %s2530_s17  ;;  %338 = vrot.lane.b32.xlu1 %v2788_v49, %s2530_s17 }
  0x76   : > { %1412 = vmatpush1.msra.mxu1 %v211_v51  ;;  %518 = vmatprep.subr.mxu0 %v210_v52 }
  0x77   : > { %1413 = vmatprep.subr.mxu1 %v210_v52  ;;  %519 = vmatpush1.msra.mxu0 %v209_v55 }
  0x78   : > { %1414 = vmatpush1.msra.mxu1 %v209_v55  ;;  %536 = vmatprep.subr.mxu0 %v256_v56 }
  0x79   : > { %340 = vrot.lane.b32.xlu0 %v2795_v53, %s2530_s17  ;;  %342 = vrot.lane.b32.xlu1 %v2798_v54, %s2530_s17 }
  0x7a   : > { %1431 = vmatprep.subr.mxu1 %v256_v56  ;;  %537 = vmatpush2.msra.mxu0 %v255_v57 }
  0x7b   : > { %1432 = vmatpush2.msra.mxu1 %v255_v57  ;;  %538 = vmatprep.subr.mxu0 %v254_v60 }
  0x7c   : > { %1433 = vmatprep.subr.mxu1 %v254_v60  ;;  %539 = vmatpush2.msra.mxu0 %v253_v61 }
  0x7d   : > { %344 = vrot.lane.b32.xlu0 %v2805_v58, %s2530_s17  ;;  %346 = vrot.lane.b32.xlu1 %v2808_v59, %s2530_s17 }
  0x7e   : > { %1434 = vmatpush2.msra.mxu1 %v253_v61  ;;  %540 = vmatprep.subr.mxu0 %v252_v62 }
  0x7f   : > { %1435 = vmatprep.subr.mxu1 %v252_v62  ;;  %541 = vmatpush2.msra.mxu0 %v251_v2 }
  0x80   : > { %542 = vmatprep.subr.mxu0 %v250_v5  ;;  %1436 = vmatpush2.msra.mxu1 %v251_v2 }
  0x81   : > { %348 = vrot.lane.b32.xlu0 %v2815_v63, %s2530_s17  ;;  %350 = vrot.lane.b32.xlu1 %v2818_v8, %s2530_s17 }
  0x82   : > { %543 = vmatpush2.msra.mxu0 %v249_v9  ;;  %1437 = vmatprep.subr.mxu1 %v250_v5 }
  0x83   : > { %544 = vmatprep.subr.mxu0 %v248_v10  ;;  %1438 = vmatpush2.msra.mxu1 %v249_v9 }
  0x84   : > { %545 = vmatpush2.msra.mxu0 %v247_v11  ;;  %1439 = vmatprep.subr.mxu1 %v248_v10 }
  0x85   : > { %352 = vrot.lane.b32.xlu0 %v2825_v12, %s2530_s17  ;;  %546 = vmatprep.subr.mxu0 %v246_v15 }
  0x86   : > { %354 = vrot.lane.b32.xlu1 %v2828_v16, %s2530_s17  ;;  %547 = vmatpush2.msra.mxu0 %v245_v17 }
  0x87   : > { %548 = vmatprep.subr.mxu0 %v244_v20  ;;  %1440 = vmatpush2.msra.mxu1 %v247_v11 }
  0x88   : > { %549 = vmatpush2.msra.mxu0 %v243_v21  ;;  %1441 = vmatprep.subr.mxu1 %v246_v15 }
  0x89   : > { %356 = vrot.lane.b32.xlu0 %v2835_v22, %s2530_s17  ;;  %550 = vmatprep.subr.mxu0 %v242_v25 }
  0x8a   : > { %358 = vrot.lane.b32.xlu1 %v2838_v26, %s2530_s17  ;;  %551 = vmatpush2.msra.mxu0 %v241_v27 }
  0x8b   : > { %1442 = vmatpush2.msra.mxu1 %v245_v17 }
  0x8c   : > { %1443 = vmatprep.subr.mxu1 %v244_v20 }
  0x8d   : > { %1444 = vmatpush2.msra.mxu1 %v243_v21 }
  0x8e   : > { %1445 = vmatprep.subr.mxu1 %v242_v25 }
  0x8f   : > { %1446 = vmatpush2.msra.mxu1 %v241_v27 }
  0xbf   : > { %v297_v31 = vpop.permute.xlu0 %296  ;;  %v301_v32 = vpop.permute.xlu1 %300 }
  0xc0   : > { %2230 = vmatmul.mubr.msk.f32.vlgmr.msra.gmra.mxu0 %vm2845_vm1, %v297_v31  ;;  %v395_v36 = vsel %vm392_vm0, %v2683_v0, %v301_v32 }
  0xc1   : > { %2231 = vmatprep.mubr.msk.f32.mxu0 %vm392_vm0, %v2696_v4 }
  0xc3   : > { %v299_v35 = vpop.permute.xlu0 %298  ;;  %v303_v37 = vpop.permute.xlu1 %302 }
  0xc4   : > { %2233 = vmatmul.mubr.msk.f32.gmra.mxu0 %vm2845_vm1, %v299_v35  ;;  %v396_v40 = vsel %vm392_vm0, %v2693_v3, %v303_v37 }
  0xc5   : > { %2234 = vmatprep.mubr.msk.f32.mxu0 %vm392_vm0, %v2705_v6 }
  0xc7   : > { %v305_v41 = vpop.permute.xlu0 %304  ;;  %v307_v45 = vpop.permute.xlu1 %306 }
  0xc8   : > { %565 = vmatmul.mubr.f32.gmra.mxu0 %v395_v36  ;;  %v397_v42 = vsel %vm392_vm0, %v2686_v1, %v305_v41  ;;  %v398_v0 = vsel %vm392_vm0, %v2696_v4, %v307_v45  ;;  %v4231_v36 = vmov 0.0  }
  0xc9   : > { %2235 = vmatprep.mubr.msk.f32.mxu0 %vm392_vm0, %v2708_v7 }
  0xcb   : > { %v309_v46 = vpop.permute.xlu0 %308  ;;  %v311_v47 = vpop.permute.xlu1 %310 }
  0xcc   : > { %571 = vmatmul.mubr.f32.gmra.mxu0 %v396_v40  ;;  %v399_v3 = vsel %vm392_vm0, %v2705_v6, %v309_v46  ;;  %v400_v1 = vsel %vm392_vm0, %v2708_v7, %v311_v47 }
  0xcd   : > { %2236 = vmatprep.mubr.msk.f32.mxu0 %vm392_vm0, %v2715_v13 }
  0xcf   : > { %v313_v50 = vpop.permute.xlu0 %312  ;;  %v315_v51 = vpop.permute.xlu1 %314 }
  0xd0   : > { %577 = vmatmul.mubr.f32.gmra.mxu0 %v397_v42  ;;  %v401_v4 = vsel %vm392_vm0, %v2715_v13, %v313_v50  ;;  %v402_v6 = vsel %vm392_vm0, %v2718_v14, %v315_v51 }
  0xd1   : > { %2237 = vmatprep.mubr.msk.f32.mxu0 %vm392_vm0, %v2718_v14 }
  0xd3   : > { %v317_v52 = vpop.permute.xlu0 %316  ;;  %v319_v55 = vpop.permute.xlu1 %318 }
  0xd4   : > { %583 = vmatmul.mubr.f32.gmra.mxu0 %v398_v0  ;;  %v403_v7 = vsel %vm392_vm0, %v2725_v18, %v317_v52  ;;  %v404_v13 = vsel %vm392_vm0, %v2728_v19, %v319_v55 }
  0xd5   : > { %2238 = vmatprep.mubr.msk.f32.mxu0 %vm392_vm0, %v2725_v18 }
  0xd7   : > { %v321_v56 = vpop.permute.xlu0 %320  ;;  %v323_v57 = vpop.permute.xlu1 %322 }
  0xd8   : > { %589 = vmatmul.mubr.f32.gmra.mxu0 %v399_v3  ;;  %v405_v14 = vsel %vm392_vm0, %v2735_v23, %v321_v56  ;;  %v406_v18 = vsel %vm392_vm0, %v2738_v24, %v323_v57 }
  0xd9   : > { %2239 = vmatprep.mubr.msk.f32.mxu0 %vm392_vm0, %v2728_v19 }
  0xdb   : > { %v325_v60 = vpop.permute.xlu0 %324  ;;  %v327_v61 = vpop.permute.xlu1 %326 }
  0xdc   : > { %595 = vmatmul.mubr.f32.gmra.mxu0 %v400_v1  ;;  %v407_v19 = vsel %vm392_vm0, %v2745_v28, %v325_v60 }
  0xdd   : > { %2240 = vmatprep.mubr.msk.f32.mxu0 %vm392_vm0, %v2735_v23  ;;  %v408_v23 = vsel %vm392_vm0, %v2748_v29, %v327_v61 }
  0xdf   : > { %v329_v62 = vpop.permute.xlu0 %328  ;;  %v331_v2 = vpop.permute.xlu1 %330 }
  0xe0   : > { %601 = vmatmul.mubr.f32.gmra.mxu0 %v401_v4 }
  0xe1   : > { %2241 = vmatprep.mubr.msk.f32.mxu0 %vm392_vm0, %v2738_v24  ;;  %v409_v24 = vsel %vm392_vm0, %v2755_v33, %v329_v62 }
  0xe3   : > { %v333_v5 = vpop.permute.xlu0 %332  ;;  %v335_v9 = vpop.permute.xlu1 %334 }
  0xe4   : > { %607 = vmatmul.mubr.f32.gmra.mxu0 %v402_v6 }
  0xe5   : > { %2242 = vmatprep.mubr.msk.f32.mxu0 %vm392_vm0, %v2745_v28  ;;  %v410_v28 = vsel %vm392_vm0, %v2758_v34, %v331_v2 }
  0xe7   : > { %v337_v10 = vpop.permute.xlu0 %336  ;;  %v339_v11 = vpop.permute.xlu1 %338 }
  0xe8   : > { %613 = vmatmul.mubr.f32.gmra.mxu0 %v403_v7 }
  0xe9   : > { %2243 = vmatprep.mubr.msk.f32.mxu0 %vm392_vm0, %v2748_v29  ;;  %v411_v29 = vsel %vm392_vm0, %v2765_v38, %v333_v5 }
  0xeb   : > { %v341_v15 = vpop.permute.xlu0 %340  ;;  %v343_v17 = vpop.permute.xlu1 %342 }
  0xec   : > { %619 = vmatmul.mubr.f32.gmra.mxu0 %v404_v13 }
  0xed   : > { %2244 = vmatprep.mubr.msk.f32.mxu0 %vm392_vm0, %v2755_v33  ;;  %v412_v33 = vsel %vm392_vm0, %v2768_v39, %v335_v9 }
  0xef   : > { %v345_v20 = vpop.permute.xlu0 %344  ;;  %v347_v21 = vpop.permute.xlu1 %346 }
  0xf0   : > { %625 = vmatmul.mubr.f32.gmra.mxu0 %v405_v14 }
  0xf1   : > { %2245 = vmatprep.mubr.msk.f32.mxu0 %vm392_vm0, %v2758_v34  ;;  %v413_v34 = vsel %vm392_vm0, %v2775_v43, %v337_v10 }
  0xf3   : > { %v349_v25 = vpop.permute.xlu0 %348  ;;  %v351_v27 = vpop.permute.xlu1 %350 }
  0xf4   : > { %631 = vmatmul.mubr.f32.gmra.mxu0 %v406_v18 }
  0xf5   : > { %2246 = vmatprep.mubr.msk.f32.mxu0 %vm392_vm0, %v2765_v38  ;;  %v414_v38 = vsel %vm392_vm0, %v2778_v44, %v339_v11 }
  0xf7   : > { %v353_v31 = vpop.permute.xlu0 %352 }
  0xf8   : > { %637 = vmatmul.mubr.f32.gmra.mxu0 %v407_v19  ;;  %v355_v32 = vpop.permute.xlu1 %354 }
  0xf9   : > { %2247 = vmatprep.mubr.msk.f32.mxu0 %vm392_vm0, %v2768_v39  ;;  %v415_v39 = vsel %vm392_vm0, %v2785_v48, %v341_v15 }
  0xfb   : > { %v357_v35 = vpop.permute.xlu0 %356 }
  0xfc   : > { %643 = vmatmul.mubr.f32.gmra.mxu0 %v408_v23 }
  0xfd   : > { %2248 = vmatprep.mubr.msk.f32.mxu0 %vm392_vm0, %v2775_v43  ;;  %v416_v43 = vsel %vm392_vm0, %v2788_v49, %v343_v17 }
 0x100   : > { %649 = vmatmul.mubr.f32.gmra.mxu0 %v409_v24 }
 0x101   : > { %2249 = vmatprep.mubr.msk.f32.mxu0 %vm392_vm0, %v2778_v44  ;;  %v417_v44 = vsel %vm392_vm0, %v2795_v53, %v345_v20 }
 0x104   : > { %655 = vmatmul.mubr.f32.gmra.mxu0 %v410_v28 }
 0x105   : > { %2250 = vmatprep.mubr.msk.f32.mxu0 %vm392_vm0, %v2785_v48  ;;  %v418_v48 = vsel %vm392_vm0, %v2798_v54, %v347_v21 }
 0x108   : > { %661 = vmatmul.mubr.f32.gmra.mxu0 %v411_v29 }
 0x109   : > { %2251 = vmatprep.mubr.msk.f32.mxu0 %vm392_vm0, %v2788_v49  ;;  %v419_v49 = vsel %vm392_vm0, %v2805_v58, %v349_v25 }
 0x10c   : > { %667 = vmatmul.mubr.f32.gmra.mxu0 %v412_v33 }
 0x10d   : > { %2252 = vmatprep.mubr.msk.f32.mxu0 %vm392_vm0, %v2795_v53  ;;  %v420_v53 = vsel %vm392_vm0, %v2808_v59, %v351_v27 }
 0x110   : > { %673 = vmatmul.mubr.f32.gmra.mxu0 %v413_v34 }
 0x111   : > { %2253 = vmatprep.mubr.msk.f32.mxu0 %vm392_vm0, %v2798_v54  ;;  %v421_v54 = vsel %vm392_vm0, %v2815_v63, %v353_v31 }
 0x114   : > { %679 = vmatmul.mubr.f32.gmra.mxu0 %v414_v38 }
 0x115   : > { %2254 = vmatprep.mubr.msk.f32.mxu0 %vm392_vm0, %v2805_v58  ;;  %v422_v58 = vsel %vm392_vm0, %v2818_v8, %v355_v32 }
 0x118   : > { %685 = vmatmul.mubr.f32.gmra.mxu0 %v415_v39 }
 0x119   : > { %2255 = vmatprep.mubr.msk.f32.mxu0 %vm392_vm0, %v2808_v59  ;;  %v423_v59 = vsel %vm392_vm0, %v2825_v12, %v357_v35 }
 0x11c   : > { %691 = vmatmul.mubr.f32.gmra.mxu0 %v416_v43 }
 0x11d   : > { %2256 = vmatprep.mubr.msk.f32.mxu0 %vm392_vm0, %v2815_v63 }
 0x120   : > { %697 = vmatmul.mubr.f32.gmra.mxu0 %v417_v44 }
 0x121   : > { %2257 = vmatprep.mubr.msk.f32.mxu0 %vm392_vm0, %v2818_v8 }
 0x124   : > { %703 = vmatmul.mubr.f32.gmra.mxu0 %v418_v48 }
 0x125   : > { %2258 = vmatprep.mubr.msk.f32.mxu0 %vm392_vm0, %v2825_v12 }
 0x128   : > { %709 = vmatmul.mubr.f32.gmra.mxu0 %v419_v49 }
 0x129   : > { %2259 = vmatprep.mubr.msk.f32.mxu0 %vm392_vm0, %v2828_v16 }
 0x12c   : > { %715 = vmatmul.mubr.f32.gmra.mxu0 %v420_v53 }
 0x12d   : > { %2260 = vmatprep.mubr.msk.f32.mxu0 %vm392_vm0, %v2835_v22  ;;  %v359_v22 = vpop.permute.xlu1 %358 }
 0x12e   : > { %v424_v63 = vsel %vm392_vm0, %v2828_v16, %v359_v22 }
 0x130   : > { %721 = vmatmul.mubr.f32.gmra.mxu0 %v421_v54 }
 0x131   : > { %2261 = vmatprep.mubr.msk.f32.mxu0 %vm392_vm0, %v2838_v26  ;;  %v257_v26 = vlaneseq }
 0x133   : > { %v2973_v40 = vshrl.u32 %v257_v26, 7 }
 0x134   : > { %727 = vmatmul.mubr.f32.gmra.mxu0 %v422_v58 }
 0x135   : > { %732 = vmatprep.mubr.f32.mxu0 %v4231_v36  ;;  %vm777_vm2 = vcmp.lt.s32.totalorder %v2973_v40, 1  ;;  %vm842_vm3 = vcmp.lt.s32.totalorder %v2973_v40, 7  ;;  %vm260_vm4 = vcmp.ne.s32.totalorder %v2973_v40, 0 }
 0x138   : > { %733 = vmatmul.mubr.f32.gmra.mxu0 %v423_v59 }
 0x139   : > { %738 = vmatprep.mubr.f32.mxu0 %v4231_v36 }
 0x13c   : > { %739 = vmatmul.mubr.f32.gmra.mxu0 %v424_v63 }
 0x180   : > { %v554_v37 = vpop.f32.mrf.mxu0 }
 0x181   : > { %971 = vrot.lane.b32.xlu0 %v554_v37, %s2530_s17  ;;  %v745_v42 = vrot.slane %v554_v37, 7 }
 0x182   : > { %v556_v8 = vpop.f32.mrf.mxu0 }
 0x183   : > { %v810_v0 = vrot.slane %v556_v8, 1 }
 0x184   : > { %v560_v41 = vpop.f32.mrf.mxu0 }
 0x185   : > { %v761_v12 = vrot.slane %v560_v41, 7  ;;  %973 = vrot.lane.b32.xlu1 %v560_v41, %s2530_s17 }
 0x186   : > { %v562_v45 = vpop.f32.mrf.mxu0 }
 0x187   : > { %v826_v16 = vrot.slane %v562_v45, 1  ;;  %v2981_v46 = vsel %vm777_vm2, %v761_v12, %v745_v42  ;;  %v2985_v3 = vsel %vm777_vm2, %v745_v42, %v761_v12 }
 0x188   : > { %v566_v47 = vpop.f32.mrf.mxu0 }
 0x189   : > { %975 = vrot.lane.b32.xlu0 %v566_v47, %s2530_s17  ;;  %v2990_v1 = vsel %vm842_vm3, %v810_v0, %v826_v16  ;;  %v2994_v50 = vsel %vm842_vm3, %v826_v16, %v810_v0  ;;  %v746_v6 = vrot.slane %v566_v47, 7 }
 0x18a   : > { %v568_v4 = vpop.f32.mrf.mxu0 }
 0x18b   : > { %v811_v55 = vrot.slane %v568_v4, 1 }
 0x18c   : > { %v572_v51 = vpop.f32.mrf.mxu0 }
 0x18d   : > { %v762_v52 = vrot.slane %v572_v51, 7  ;;  %977 = vrot.lane.b32.xlu1 %v572_v51, %s2530_s17 }
 0x18e   : > { %v574_v7 = vpop.f32.mrf.mxu0 }
 0x18f   : > { %v827_v13 = vrot.slane %v574_v7, 1  ;;  %v2999_v56 = vsel %vm777_vm2, %v762_v52, %v746_v6  ;;  %v3003_v14 = vsel %vm777_vm2, %v746_v6, %v762_v52 }
 0x190   : > { %v578_v57 = vpop.f32.mrf.mxu0 }
 0x191   : > { %979 = vrot.lane.b32.xlu0 %v578_v57, %s2530_s17  ;;  %v3008_v18 = vsel %vm842_vm3, %v811_v55, %v827_v13  ;;  %v3012_v60 = vsel %vm842_vm3, %v827_v13, %v811_v55  ;;  %v747_v23 = vrot.slane %v578_v57, 7 }
 0x192   : > { %v580_v19 = vpop.f32.mrf.mxu0 }
 0x193   : > { %v812_v2 = vrot.slane %v580_v19, 1 }
 0x194   : > { %v584_v61 = vpop.f32.mrf.mxu0 }
 0x195   : > { %v763_v62 = vrot.slane %v584_v61, 7  ;;  %981 = vrot.lane.b32.xlu1 %v584_v61, %s2530_s17 }
 0x196   : > { %v586_v24 = vpop.f32.mrf.mxu0 }
 0x197   : > { %v828_v28 = vrot.slane %v586_v24, 1  ;;  %v3017_v5 = vsel %vm777_vm2, %v763_v62, %v747_v23  ;;  %v3021_v29 = vsel %vm777_vm2, %v747_v23, %v763_v62 }
 0x198   : > { %v590_v9 = vpop.f32.mrf.mxu0 }
 0x199   : > { %983 = vrot.lane.b32.xlu0 %v590_v9, %s2530_s17  ;;  %v3026_v33 = vsel %vm842_vm3, %v812_v2, %v828_v28  ;;  %v3030_v10 = vsel %vm842_vm3, %v828_v28, %v812_v2  ;;  %v748_v38 = vrot.slane %v590_v9, 7 }
 0x19a   : > { %v592_v34 = vpop.f32.mrf.mxu0 }
 0x19b   : > { %v813_v17 = vrot.slane %v592_v34, 1 }
 0x19c   : > { %v596_v11 = vpop.f32.mrf.mxu0 }
 0x19d   : > { %v764_v15 = vrot.slane %v596_v11, 7  ;;  %985 = vrot.lane.b32.xlu1 %v596_v11, %s2530_s17 }
 0x19e   : > { %v598_v39 = vpop.f32.mrf.mxu0 }
 0x19f   : > { %v829_v43 = vrot.slane %v598_v39, 1  ;;  %v3035_v20 = vsel %vm777_vm2, %v764_v15, %v748_v38  ;;  %v3039_v44 = vsel %vm777_vm2, %v748_v38, %v764_v15 }
 0x1a0   : > { %v602_v21 = vpop.f32.mrf.mxu0 }
 0x1a1   : > { %987 = vrot.lane.b32.xlu0 %v602_v21, %s2530_s17  ;;  %v3044_v48 = vsel %vm842_vm3, %v813_v17, %v829_v43  ;;  %v3048_v25 = vsel %vm842_vm3, %v829_v43, %v813_v17  ;;  %v749_v53 = vrot.slane %v602_v21, 7 }
 0x1a2   : > { %v604_v49 = vpop.f32.mrf.mxu0 }
 0x1a3   : > { %v814_v32 = vrot.slane %v604_v49, 1 }
 0x1a4   : > { %v608_v27 = vpop.f32.mrf.mxu0 }
 0x1a5   : > { %v765_v31 = vrot.slane %v608_v27, 7  ;;  %989 = vrot.lane.b32.xlu1 %v608_v27, %s2530_s17 }
 0x1a6   : > { %v610_v54 = vpop.f32.mrf.mxu0 }
 0x1a7   : > { %v830_v58 = vrot.slane %v610_v54, 1  ;;  %v3053_v35 = vsel %vm777_vm2, %v765_v31, %v749_v53  ;;  %v3057_v59 = vsel %vm777_vm2, %v749_v53, %v765_v31 }
 0x1a8   : > { %v614_v22 = vpop.f32.mrf.mxu0 }
 0x1a9   : > { %991 = vrot.lane.b32.xlu0 %v614_v22, %s2530_s17  ;;  %v3062_v63 = vsel %vm842_vm3, %v814_v32, %v830_v58  ;;  %v3066_v26 = vsel %vm842_vm3, %v830_v58, %v814_v32  ;;  %v750_v41 = vrot.slane %v614_v22, 7 }
 0x1aa   : > { %v616_v37 = vpop.f32.mrf.mxu0 }
 0x1ab   : > { %v815_v45 = vrot.slane %v616_v37, 1 }
 0x1ac   : > { %v620_v8 = vpop.f32.mrf.mxu0 }
 0x1ad   : > { %v766_v42 = vrot.slane %v620_v8, 7  ;;  %993 = vrot.lane.b32.xlu1 %v620_v8, %s2530_s17 }
 0x1ae   : > { %v622_v12 = vpop.f32.mrf.mxu0 }
 0x1af   : > { %v831_v0 = vrot.slane %v622_v12, 1  ;;  %v3071_v16 = vsel %vm777_vm2, %v766_v42, %v750_v41  ;;  %v3075_v47 = vsel %vm777_vm2, %v750_v41, %v766_v42 }
 0x1b0   : > { %v626_v4 = vpop.f32.mrf.mxu0 }
 0x1b1   : > { %995 = vrot.lane.b32.xlu0 %v626_v4, %s2530_s17  ;;  %v3080_v51 = vsel %vm842_vm3, %v815_v45, %v831_v0  ;;  %v3084_v6 = vsel %vm842_vm3, %v831_v0, %v815_v45  ;;  %v751_v55 = vrot.slane %v626_v4, 7 }
 0x1b2   : > { %v628_v52 = vpop.f32.mrf.mxu0 }
 0x1b3   : > { %v816_v19 = vrot.slane %v628_v52, 1 }
 0x1b4   : > { %v632_v7 = vpop.f32.mrf.mxu0 }
 0x1b5   : > { %v767_v13 = vrot.slane %v632_v7, 7  ;;  %997 = vrot.lane.b32.xlu1 %v632_v7, %s2530_s17 }
 0x1b6   : > { %v634_v57 = vpop.f32.mrf.mxu0 }
 0x1b7   : > { %v832_v61 = vrot.slane %v634_v57, 1  ;;  %v3089_v23 = vsel %vm777_vm2, %v767_v13, %v751_v55  ;;  %v3093_v62 = vsel %vm777_vm2, %v751_v55, %v767_v13 }
 0x1b8   : > { %v638_v24 = vpop.f32.mrf.mxu0 }
 0x1b9   : > { %999 = vrot.lane.b32.xlu0 %v638_v24, %s2530_s17  ;;  %v3098_v2 = vsel %vm842_vm3, %v816_v19, %v832_v61  ;;  %v3102_v28 = vsel %vm842_vm3, %v832_v61, %v816_v19  ;;  %v752_v11 = vrot.slane %v638_v24, 7 }
 0x1ba   : > { %v640_v9 = vpop.f32.mrf.mxu0 }
 0x1bb   : > { %v817_v39 = vrot.slane %v640_v9, 1 }
 0x1bc   : > { %v644_v34 = vpop.f32.mrf.mxu0 }
 0x1bd   : > { %v768_v38 = vrot.slane %v644_v34, 7  ;;  %1001 = vrot.lane.b32.xlu1 %v644_v34, %s2530_s17 }
 0x1be   : > { %v646_v15 = vpop.f32.mrf.mxu0 }
 0x1bf   : > { %v833_v17 = vrot.slane %v646_v15, 1  ;;  %v3107_v43 = vsel %vm777_vm2, %v768_v38, %v752_v11  ;;  %v3111_v21 = vsel %vm777_vm2, %v752_v11, %v768_v38 }
 0x1c0   : > { %v650_v49 = vpop.f32.mrf.mxu0 }
 0x1c1   : > { %1003 = vrot.lane.b32.xlu0 %v650_v49, %s2530_s17  ;;  %v3116_v27 = vsel %vm842_vm3, %v817_v39, %v833_v17  ;;  %v3120_v53 = vsel %vm842_vm3, %v833_v17, %v817_v39  ;;  %v753_v32 = vrot.slane %v650_v49, 7 }
 0x1c2   : > { %v652_v31 = vpop.f32.mrf.mxu0 }
 0x1c3   : > { %v818_v37 = vrot.slane %v652_v31, 1 }
 0x1c4   : > { %v656_v54 = vpop.f32.mrf.mxu0 }
 0x1c5   : > { %v769_v58 = vrot.slane %v656_v54, 7  ;;  %1005 = vrot.lane.b32.xlu0 %v656_v54, %s2530_s17 }
 0x1c6   : > { %v658_v22 = vpop.f32.mrf.mxu0 }
 0x1c7   : > { %v834_v8 = vrot.slane %v658_v22, 1  ;;  %v3125_v41 = vsel %vm777_vm2, %v769_v58, %v753_v32  ;;  %v3129_v42 = vsel %vm777_vm2, %v753_v32, %v769_v58 }
 0x1c8   : > { %v662_v12 = vpop.f32.mrf.mxu0 }
 0x1c9   : > { %1007 = vrot.lane.b32.xlu0 %v662_v12, %s2530_s17  ;;  %v3134_v45 = vsel %vm842_vm3, %v818_v37, %v834_v8  ;;  %v3138_v0 = vsel %vm842_vm3, %v834_v8, %v818_v37  ;;  %v754_v7 = vrot.slane %v662_v12, 7 }
 0x1ca   : > { %v664_v4 = vpop.f32.mrf.mxu0 }
 0x1cb   : > { %v819_v57 = vrot.slane %v664_v4, 1 }
 0x1cc   : > { %v668_v52 = vpop.f32.mrf.mxu0 }
 0x1cd   : > { %v770_v55 = vrot.slane %v668_v52, 7  ;;  %1009 = vrot.lane.b32.xlu0 %v668_v52, %s2530_s17 }
 0x1ce   : > { %v670_v13 = vpop.f32.mrf.mxu0 }
 0x1cf   : > { %v835_v19 = vrot.slane %v670_v13, 1  ;;  %v3143_v61 = vsel %vm777_vm2, %v770_v55, %v754_v7  ;;  %v3147_v24 = vsel %vm777_vm2, %v754_v7, %v770_v55 }
 0x1d0   : > { %v674_v9 = vpop.f32.mrf.mxu0 }
 0x1d1   : > { %1011 = vrot.lane.b32.xlu0 %v674_v9, %s2530_s17  ;;  %v3152_v34 = vsel %vm842_vm3, %v819_v57, %v835_v19  ;;  %v3156_v11 = vsel %vm842_vm3, %v835_v19, %v819_v57  ;;  %v755_v39 = vrot.slane %v674_v9, 7 }
 0x1d2   : > { %v676_v38 = vpop.f32.mrf.mxu0 }
 0x1d3   : > { %v820_v31 = vrot.slane %v676_v38, 1 }
 0x1d4   : > { %v680_v15 = vpop.f32.mrf.mxu0 }
 0x1d5   : > { %v771_v17 = vrot.slane %v680_v15, 7  ;;  %1013 = vrot.lane.b32.xlu0 %v680_v15, %s2530_s17 }
 0x1d6   : > { %v682_v49 = vpop.f32.mrf.mxu0 }
 0x1d7   : > { %v836_v54 = vrot.slane %v682_v49, 1  ;;  %v3161_v32 = vsel %vm777_vm2, %v771_v17, %v755_v39  ;;  %v3165_v58 = vsel %vm777_vm2, %v755_v39, %v771_v17 }
 0x1d8   : > { %v686_v22 = vpop.f32.mrf.mxu0 }
 0x1d9   : > { %1015 = vrot.lane.b32.xlu0 %v686_v22, %s2530_s17  ;;  %v3170_v37 = vsel %vm842_vm3, %v820_v31, %v836_v54  ;;  %v3174_v8 = vsel %vm842_vm3, %v836_v54, %v820_v31  ;;  %v756_v52 = vrot.slane %v686_v22, 7 }
 0x1da   : > { %v688_v12 = vpop.f32.mrf.mxu0 }
 0x1db   : > { %v821_v13 = vrot.slane %v688_v12, 1 }
 0x1dc   : > { %v692_v4 = vpop.f32.mrf.mxu0 }
 0x1dd   : > { %v772_v7 = vrot.slane %v692_v4, 7  ;;  %1017 = vrot.lane.b32.xlu0 %v692_v4, %s2530_s17 }
 0x1de   : > { %v694_v55 = vpop.f32.mrf.mxu0 }
 0x1df   : > { %v837_v57 = vrot.slane %v694_v55, 1  ;;  %v3179_v19 = vsel %vm777_vm2, %v772_v7, %v756_v52  ;;  %v3183_v9 = vsel %vm777_vm2, %v756_v52, %v772_v7 }
 0x1e0   : > { %v698_v38 = vpop.f32.mrf.mxu0 }
 0x1e1   : > { %1019 = vrot.lane.b32.xlu0 %v698_v38, %s2530_s17  ;;  %v3188_v15 = vsel %vm842_vm3, %v821_v13, %v837_v57  ;;  %v3192_v39 = vsel %vm842_vm3, %v837_v57, %v821_v13  ;;  %v757_v31 = vrot.slane %v698_v38, 7 }
 0x1e2   : > { %v700_v17 = vpop.f32.mrf.mxu0 }
 0x1e3   : > { %v822_v12 = vrot.slane %v700_v17, 1 }
 0x1e4   : > { %v704_v49 = vpop.f32.mrf.mxu0 }
 0x1e5   : > { %v773_v54 = vrot.slane %v704_v49, 7  ;;  %1021 = vrot.lane.b32.xlu0 %v704_v49, %s2530_s17 }
 0x1e6   : > { %v706_v22 = vpop.f32.mrf.mxu0 }
 0x1e7   : > { %v838_v4 = vrot.slane %v706_v22, 1  ;;  %v3197_v52 = vsel %vm777_vm2, %v773_v54, %v757_v31  ;;  %v3201_v7 = vsel %vm777_vm2, %v757_v31, %v773_v54 }
 0x1e8   : > { %4249 = vst [vmem:[#allocation12_spill] sm:$0xff] %v3197_v52  ;;  %4250 = vst [vmem:[#allocation13_spill] sm:$0xff] %v3201_v7  ;;  %v710_v55 = vpop.f32.mrf.mxu0 }
 0x1e9   : > { %1023 = vrot.lane.b32.xlu0 %v710_v55, %s2530_s17  ;;  %v3206_v13 = vsel %vm842_vm3, %v822_v12, %v838_v4  ;;  %v3210_v57 = vsel %vm842_vm3, %v838_v4, %v822_v12  ;;  %v758_v49 = vrot.slane %v710_v55, 7  ;;  %v3232_v55 = vadd.s32 8, %v2973_v40 }
 0x1ea   : > { %4251 = vst [vmem:[#allocation14_spill] sm:$0xff] %v3206_v13  ;;  %4252 = vst [vmem:[#allocation15_spill] sm:$0xff] %v3210_v57  ;;  %v712_v38 = vpop.f32.mrf.mxu0 }
 0x1eb   : > { %v823_v31 = vrot.slane %v712_v38, 1  ;;  %v875_v38 = vsel %vm260_vm4, %v2981_v46, 0.0  ;;  %vm263_vm5 = vcmp.ne.s32.totalorder %v3232_v55, 15  ;;  %v2399_v55 = vld [vmem:[%s2672_s24 + $0xf8] sm:$0xff] }
 0x1ec   : > { %v716_v17 = vpop.f32.mrf.mxu0 }
 0x1ed   : > { %v774_v22 = vrot.slane %v716_v17, 7  ;;  %1025 = vrot.lane.b32.xlu0 %v716_v17, %s2530_s17 }
 0x1ee   : > { %v718_v36 = vpop.f32.mrf.mxu0 }
 0x1ef   : > { %v839_v54 = vrot.slane %v718_v36, 1  ;;  %v3215_v30 = vsel %vm777_vm2, %v774_v22, %v758_v49  ;;  %v3219_v7 = vsel %vm777_vm2, %v758_v49, %v774_v22 }
 0x1f0   : > { %4253 = vst [vmem:[#allocation16_spill] sm:$0xff] %v3215_v30  ;;  %4254 = vst [vmem:[#allocation17_spill] sm:$0xff] %v3219_v7  ;;  %v722_v13 = vpop.f32.mrf.mxu0 }
 0x1f1   : > { %1027 = vrot.lane.b32.xlu0 %v722_v13, %s2530_s17  ;;  %v3225_v12 = vsel %vm842_vm3, %v823_v31, %v839_v54  ;;  %v3229_v36 = vsel %vm842_vm3, %v839_v54, %v823_v31  ;;  %v759_v7 = vrot.slane %v722_v13, 7 }
 0x1f2   : > { %4255 = vst [vmem:[#allocation18_spill] sm:$0xff] %v3225_v12  ;;  %4256 = vst [vmem:[#allocation19_spill] sm:$0xff] %v3229_v36  ;;  %v724_v4 = vpop.f32.mrf.mxu0 }
 0x1f3   : > { %v972_v17 = vpop.permute.xlu0 %971  ;;  %v824_v54 = vrot.slane %v724_v4, 1 }
 0x1f4   : > { %v1067_v49 = vadd.f32 %v972_v17, %v875_v38  ;;  %v728_v22 = vpop.f32.mrf.mxu0  ;;  %v908_v17 = vsel %vm263_vm5, %v2994_v50, 0.0  ;;  %v877_v50 = vsel %vm260_vm4, %v2999_v56, 0.0 }
 0x1f5   : > { %v775_v30 = vrot.slane %v728_v22, 7  ;;  %1029 = vrot.lane.b32.xlu0 %v728_v22, %s2530_s17 }
 0x1f6   : > { %v3239_v12 = vadd.f32 %v1067_v49, %v2990_v1  ;;  %v730_v31 = vpop.f32.mrf.mxu0 }
 0x1f7   : > { %v840_v36 = vrot.slane %v730_v31, 1  ;;  %v974_v57 = vpop.permute.xlu1 %973  ;;  %v3244_v52 = vsel %vm777_vm2, %v775_v30, %v759_v7  ;;  %v3248_v46 = vsel %vm777_vm2, %v759_v7, %v775_v30 }
 0x1f8   : > { %4257 = vst [vmem:[#allocation20_spill] sm:$0xff] %v3248_v46  ;;  %v1131_v13 = vmax.f32 %v3239_v12, 0.0  ;;  %v1068_v38 = vadd.f32 %v974_v57, %v2985_v3  ;;  %v734_v1 = vpop.f32.mrf.mxu0 }
 0x1f9   : > { %1031 = vrot.lane.b32.xlu0 %v734_v1, %s2530_s17  ;;  %v3258_v4 = vsel %vm842_vm3, %v824_v54, %v840_v36  ;;  %v3262_v49 = vsel %vm842_vm3, %v840_v36, %v824_v54  ;;  %v760_v46 = vrot.slane %v734_v1, 7 }
 0x1fa   : > { %v3264_v30 = vadd.f32 %v1068_v38, %v908_v17  ;;  %1195 = vrot.lane.b32.xlu1 %v1131_v13, %s2530_s17  ;;  %v3269_v3 = vpop.f32.mrf.mxu0 }
 0x1fb   : > { %v976_v7 = vpop.permute.xlu0 %975 }
 0x1fc   : > { %v1132_v57 = vmax.f32 %v3264_v30, 0.0  ;;  %v1069_v22 = vadd.f32 %v976_v7, %v877_v50  ;;  %v740_v31 = vpop.f32.mrf.mxu0 }
 0x1fd   : > { %v776_v36 = vrot.slane %v740_v31, 7  ;;  %1033 = vrot.lane.b32.xlu0 %v740_v31, %s2530_s17 }
 0x1fe   : > { %v1101_v54 = vadd.f32 %v1069_v22, %v3008_v18  ;;  %1197 = vrot.lane.b32.xlu1 %v1132_v57, %s2530_s17  ;;  %v910_v18 = vsel %vm263_vm5, %v3012_v60, 0.0 }
 0x1ff   : > { %v978_v38 = vpop.permute.xlu1 %977  ;;  %v3282_v17 = vsel %vm777_vm2, %v776_v36, %v760_v46  ;;  %v3286_v56 = vsel %vm777_vm2, %v760_v46, %v776_v36  ;;  %v879_v46 = vsel %vm260_vm4, %v3017_v5, 0.0 }
 0x200   : > { %v3288_v7 = vmax.f32 %v1101_v54, 0.0  ;;  %v1070_v1 = vadd.f32 %v978_v38, %v3003_v14 }
 0x202   : > { %v1102_v50 = vadd.f32 %v1070_v1, %v910_v18  ;;  %2262 = vmatprep.mubr.msk.f32.mxu1 %vm392_vm0, %v3288_v7  ;;  %1199 = vrot.lane.b32.xlu1 %v3288_v7, %s2530_s17  ;;  %v912_v1 = vsel %vm263_vm5, %v3030_v10, 0.0 }
 0x203   : > { %v980_v22 = vpop.permute.xlu0 %979 }
 0x204   : > { %v3301_v31 = vmax.f32 %v1102_v50, 0.0  ;;  %v1071_v36 = vadd.f32 %v980_v22, %v879_v46 }
 0x206   : > { %v1103_v14 = vadd.f32 %v1071_v36, %v3026_v33  ;;  %1201 = vrot.lane.b32.xlu1 %v3301_v31, %s2530_s17  ;;  %v881_v33 = vsel %vm260_vm4, %v3035_v20, 0.0 }
 0x207   : > { %v982_v60 = vpop.permute.xlu1 %981 }
 0x208   : > { %v3306_v54 = vmax.f32 %v1103_v14, 0.0  ;;  %v1072_v38 = vadd.f32 %v982_v60, %v3021_v29  ;;  %v914_v14 = vsel %vm263_vm5, %v3048_v25, 0.0 }
 0x20a   : > { %v1104_v18 = vadd.f32 %v1072_v38, %v912_v1  ;;  %1203 = vrot.lane.b32.xlu1 %v3306_v54, %s2530_s17 }
 0x20b   : > { %v984_v5 = vpop.permute.xlu0 %983 }
 0x20c   : > { %v3317_v50 = vmax.f32 %v1104_v18, 0.0  ;;  %v1073_v22 = vadd.f32 %v984_v5, %v881_v33  ;;  %v916_v33 = vsel %vm263_vm5, %v3066_v26, 0.0 }
 0x20e   : > { %v1105_v46 = vadd.f32 %v1073_v22, %v3044_v48  ;;  %1205 = vrot.lane.b32.xlu1 %v3317_v50, %s2530_s17  ;;  %v883_v48 = vsel %vm260_vm4, %v3053_v35, 0.0 }
 0x20f   : > { %v986_v29 = vpop.permute.xlu1 %985 }
 0x210   : > { %v3322_v36 = vmax.f32 %v1105_v46, 0.0  ;;  %v1074_v10 = vadd.f32 %v986_v29, %v3039_v44 }
 0x212   : > { %v1106_v60 = vadd.f32 %v1074_v10, %v914_v14  ;;  %1207 = vrot.lane.b32.xlu1 %v3322_v36, %s2530_s17 }
 0x213   : > { %v988_v20 = vpop.permute.xlu0 %987 }
 0x214   : > { %v3333_v38 = vmax.f32 %v1106_v60, 0.0  ;;  %v1075_v1 = vadd.f32 %v988_v20, %v883_v48  ;;  %v918_v60 = vsel %vm263_vm5, %v3084_v6, 0.0 }
 0x216   : > { %v1107_v18 = vadd.f32 %v1075_v1, %v3062_v63  ;;  %1209 = vrot.lane.b32.xlu1 %v3333_v38, %s2530_s17  ;;  %v885_v63 = vsel %vm260_vm4, %v3071_v16, 0.0 }
 0x217   : > { %v990_v44 = vpop.permute.xlu1 %989 }
 0x218   : > { %v3338_v5 = vmax.f32 %v1107_v18, 0.0  ;;  %v1076_v25 = vadd.f32 %v990_v44, %v3057_v59 }
 0x21a   : > { %v1108_v22 = vadd.f32 %v1076_v25, %v916_v33  ;;  %1211 = vrot.lane.b32.xlu1 %v3338_v5, %s2530_s17  ;;  %v920_v25 = vsel %vm263_vm5, %v3102_v28, 0.0 }
 0x21b   : > { %v992_v35 = vpop.permute.xlu0 %991 }
 0x21c   : > { %v3349_v46 = vmax.f32 %v1108_v22, 0.0  ;;  %v1077_v29 = vadd.f32 %v992_v35, %v885_v63 }
 0x21e   : > { %v1109_v10 = vadd.f32 %v1077_v29, %v3080_v51  ;;  %1213 = vrot.lane.b32.xlu1 %v3349_v46, %s2530_s17  ;;  %v887_v51 = vsel %vm260_vm4, %v3089_v23, 0.0 }
 0x21f   : > { %v994_v59 = vpop.permute.xlu1 %993 }
 0x220   : > { %v3354_v14 = vmax.f32 %v1109_v10, 0.0  ;;  %v1078_v26 = vadd.f32 %v994_v59, %v3075_v47  ;;  %v922_v10 = vsel %vm263_vm5, %v3120_v53, 0.0 }
 0x222   : > { %v1110_v20 = vadd.f32 %v1078_v26, %v918_v60  ;;  %1215 = vrot.lane.b32.xlu1 %v3354_v14, %s2530_s17 }
 0x223   : > { %v996_v16 = vpop.permute.xlu0 %995 }
 0x224   : > { %v3365_v48 = vmax.f32 %v1110_v20, 0.0  ;;  %v1079_v1 = vadd.f32 %v996_v16, %v887_v51  ;;  %v924_v51 = vsel %vm263_vm5, %v3138_v0, 0.0 }
 0x226   : > { %v1111_v18 = vadd.f32 %v1079_v1, %v3098_v2  ;;  %1217 = vrot.lane.b32.xlu1 %v3365_v48, %s2530_s17  ;;  %v889_v2 = vsel %vm260_vm4, %v3107_v43, 0.0 }
 0x227   : > { %v998_v47 = vpop.permute.xlu1 %997 }
 0x228   : > { %v3370_v44 = vmax.f32 %v1111_v18, 0.0  ;;  %v1080_v6 = vadd.f32 %v998_v47, %v3093_v62 }
 0x22a   : > { %v1112_v33 = vadd.f32 %v1080_v6, %v920_v25  ;;  %1219 = vrot.lane.b32.xlu1 %v3370_v44, %s2530_s17 }
 0x22b   : > { %v1000_v23 = vpop.permute.xlu0 %999 }
 0x22c   : > { %v3381_v22 = vmax.f32 %v1112_v33, 0.0  ;;  %v1081_v35 = vadd.f32 %v1000_v23, %v889_v2  ;;  %v926_v33 = vsel %vm263_vm5, %v3156_v11, 0.0 }
 0x22e   : > { %v1113_v63 = vadd.f32 %v1081_v35, %v3116_v27  ;;  %1221 = vrot.lane.b32.xlu1 %v3381_v22, %s2530_s17  ;;  %v891_v27 = vsel %vm260_vm4, %v3125_v41, 0.0 }
 0x22f   : > { %v1002_v62 = vpop.permute.xlu1 %1001 }
 0x230   : > { %v3386_v29 = vmax.f32 %v1113_v63, 0.0  ;;  %v1082_v28 = vadd.f32 %v1002_v62, %v3111_v21 }
 0x232   : > { %v1114_v59 = vadd.f32 %v1082_v28, %v922_v10  ;;  %1223 = vrot.lane.b32.xlu1 %v3386_v29, %s2530_s17  ;;  %v928_v28 = vsel %vm263_vm5, %v3174_v8, 0.0 }
 0x233   : > { %v1004_v43 = vpop.permute.xlu0 %1003 }
 0x234   : > { %v3397_v26 = vmax.f32 %v1114_v59, 0.0  ;;  %v1083_v60 = vadd.f32 %v1004_v43, %v891_v27 }
 0x236   : > { %v1115_v20 = vadd.f32 %v1083_v60, %v3134_v45  ;;  %1225 = vrot.lane.b32.xlu1 %v3397_v26, %s2530_s17  ;;  %v893_v45 = vsel %vm260_vm4, %v3143_v61, 0.0 }
 0x237   : > { %v1006_v21 = vpop.permute.xlu0 %1005 }
 0x238   : > { %v3402_v16 = vmax.f32 %v1115_v20, 0.0  ;;  %v1084_v53 = vadd.f32 %v1006_v21, %v3129_v42  ;;  %v930_v20 = vsel %vm263_vm5, %v3192_v39, 0.0  ;;  %v4260_v39 = vld [vmem:[#allocation13_spill] sm:$0xff] }
 0x23a   : > { %v1116_v1 = vadd.f32 %v1084_v53, %v924_v51  ;;  %1227 = vrot.lane.b32.xlu0 %v3402_v16, %s2530_s17  ;;  %v4258_v53 = vld [vmem:[#allocation12_spill] sm:$0xff] }
 0x23b   : > { %v1008_v41 = vpop.permute.xlu0 %1007 }
 0x23c   : > { %v3413_v18 = vmax.f32 %v1116_v1, 0.0  ;;  %v1085_v47 = vadd.f32 %v1008_v41, %v893_v45  ;;  %v4259_v41 = vld [vmem:[#allocation14_spill] sm:$0xff] }
 0x23e   : > { %v1117_v6 = vadd.f32 %v1085_v47, %v3152_v34  ;;  %1229 = vrot.lane.b32.xlu1 %v3413_v18, %s2530_s17  ;;  %v895_v34 = vsel %vm260_vm4, %v3161_v32, 0.0 }
 0x23f   : > { %v1010_v42 = vpop.permute.xlu0 %1009 }
 0x240   : > { %v3418_v25 = vmax.f32 %v1117_v6, 0.0  ;;  %v1086_v0 = vadd.f32 %v1010_v42, %v3147_v24  ;;  %v4261_v42 = vld [vmem:[#allocation15_spill] sm:$0xff] }
 0x242   : > { %v1118_v23 = vadd.f32 %v1086_v0, %v926_v33  ;;  %1231 = vrot.lane.b32.xlu0 %v3418_v25, %s2530_s17  ;;  %v932_v0 = vsel %vm263_vm5, %v4261_v42, 0.0  ;;  %v825_v42 = vrot.slane %v3269_v3, 1 }
 0x243   : > { %v1012_v61 = vpop.permute.xlu0 %1011 }
 0x244   : > { %v3429_v2 = vmax.f32 %v1118_v23, 0.0  ;;  %v1087_v35 = vadd.f32 %v1012_v61, %v895_v34  ;;  %v4262_v61 = vld [vmem:[#allocation16_spill] sm:$0xff] }
 0x245   : > { %v901_v34 = vsel %vm260_vm4, %v4262_v61, 0.0 }
 0x246   : > { %v1119_v63 = vadd.f32 %v1087_v35, %v3170_v37  ;;  %1233 = vrot.lane.b32.xlu1 %v3429_v2, %s2530_s17  ;;  %v897_v37 = vsel %vm260_vm4, %v3179_v19, 0.0 }
 0x247   : > { %v1014_v24 = vpop.permute.xlu0 %1013 }
 0x248   : > { %v3434_v62 = vmax.f32 %v1119_v63, 0.0  ;;  %v1088_v11 = vadd.f32 %v1014_v24, %v3165_v58  ;;  %v4263_v24 = vld [vmem:[#allocation18_spill] sm:$0xff] }
 0x24a   : > { %v1120_v10 = vadd.f32 %v1088_v11, %v928_v28  ;;  %1235 = vrot.lane.b32.xlu0 %v3434_v62, %s2530_s17 }
 0x24b   : > { %v1016_v32 = vpop.permute.xlu0 %1015 }
 0x24c   : > { %v3445_v59 = vmax.f32 %v1120_v10, 0.0  ;;  %v1089_v43 = vadd.f32 %v1016_v32, %v897_v37  ;;  %v4264_v32 = vld [vmem:[#allocation17_spill] sm:$0xff] }
 0x24e   : > { %v1121_v27 = vadd.f32 %v1089_v43, %v3188_v15  ;;  %1237 = vrot.lane.b32.xlu1 %v3445_v59, %s2530_s17  ;;  %v899_v15 = vsel %vm260_vm4, %v4258_v53, 0.0  ;;  %v4265_v43 = vld [vmem:[#allocation19_spill] sm:$0xff]  ;;  %v742_v53 = vpop.f32.mrf.mxu0 }
 0x24f   : > { %v1018_v58 = vpop.permute.xlu0 %1017 }
 0x250   : > { %v3450_v60 = vmax.f32 %v1121_v27, 0.0  ;;  %v1090_v8 = vadd.f32 %v1018_v58, %v3183_v9  ;;  %v934_v27 = vsel %vm263_vm5, %v4265_v43, 0.0 }
 0x252   : > { %v1122_v21 = vadd.f32 %v1090_v8, %v930_v20  ;;  %1239 = vrot.lane.b32.xlu0 %v3450_v60, %s2530_s17  ;;  %v903_v20 = vsel %vm260_vm4, %v3244_v52, 0.0 }
 0x253   : > { %v1020_v19 = vpop.permute.xlu0 %1019 }
 0x254   : > { %v3461_v51 = vmax.f32 %v1122_v21, 0.0  ;;  %v1091_v1 = vadd.f32 %v1020_v19, %v899_v15 }
 0x256   : > { %v1123_v45 = vadd.f32 %v1091_v1, %v4259_v41  ;;  %1241 = vrot.lane.b32.xlu1 %v3461_v51, %s2530_s17 }
 0x257   : > { %v1022_v9 = vpop.permute.xlu0 %1021 }
 0x258   : > { %v3466_v47 = vmax.f32 %v1123_v45, 0.0  ;;  %v1092_v6 = vadd.f32 %v1022_v9, %v4260_v39  ;;  %v4266_v45 = vld [vmem:[#allocation20_spill] sm:$0xff]  ;;  %v841_v39 = vrot.slane %v742_v53, 1 }
 0x25a   : > { %v1124_v33 = vadd.f32 %v1092_v6, %v932_v0  ;;  %1243 = vrot.lane.b32.xlu0 %v3466_v47, %s2530_s17  ;;  %v936_v6 = vsel %vm263_vm5, %v3262_v49, 0.0  ;;  %v905_v0 = vsel %vm260_vm4, %v3282_v17, 0.0  ;;  %v874_v49 = vsel %vm842_vm3, %v841_v39, %v825_v42 }
 0x25b   : > { %v1024_v23 = vpop.permute.xlu0 %1023 }
 0x25c   : > { %v3477_v35 = vmax.f32 %v1124_v33, 0.0  ;;  %v1093_v63 = vadd.f32 %v1024_v23, %v901_v34  ;;  %v858_v34 = vsel %vm842_vm3, %v825_v42, %v841_v39 }
 0x25e   : > { %v1125_v11 = vadd.f32 %v1093_v63, %v4263_v24  ;;  %1245 = vrot.lane.b32.xlu1 %v3477_v35, %s2530_s17 }
 0x25f   : > { %v1026_v28 = vpop.permute.xlu0 %1025 }
 0x260   : > { %v3482_v10 = vmax.f32 %v1125_v11, 0.0  ;;  %v1094_v37 = vadd.f32 %v1026_v28, %v4264_v32  ;;  %v938_v32 = vsel %vm263_vm5, %v874_v49, 0.0 }
 0x262   : > { %v1126_v58 = vadd.f32 %v1094_v37, %v934_v27  ;;  %1247 = vrot.lane.b32.xlu0 %v3482_v10, %s2530_s17 }
 0x263   : > { %v1028_v8 = vpop.permute.xlu0 %1027 }
 0x264   : > { %v3493_v21 = vmax.f32 %v1126_v58, 0.0  ;;  %v1095_v19 = vadd.f32 %v1028_v8, %v903_v20 }
 0x266   : > { %v1127_v15 = vadd.f32 %v1095_v19, %v3258_v4  ;;  %1249 = vrot.lane.b32.xlu1 %v3493_v21, %s2530_s17 }
 0x267   : > { %v1030_v1 = vpop.permute.xlu0 %1029 }
 0x268   : > { %v3498_v41 = vmax.f32 %v1127_v15, 0.0  ;;  %v1096_v9 = vadd.f32 %v1030_v1, %v4266_v45 }
 0x26a   : > { %v1128_v52 = vadd.f32 %v1096_v9, %v936_v6  ;;  %1251 = vrot.lane.b32.xlu0 %v3498_v41, %s2530_s17 }
 0x26b   : > { %v1032_v4 = vpop.permute.xlu0 %1031 }
 0x26c   : > { %v3510_v33 = vmax.f32 %v1128_v52, 0.0  ;;  %v1097_v23 = vadd.f32 %v1032_v4, %v905_v0  ;;  %v1196_v61 = vpop.permute.xlu1 %1195 }
 0x26d   : > { %2264 = vmatmul.mubr.msk.f32.vlgmr.msra.gmra.mxu1 %vm2845_vm1, %v1196_v61 }
 0x26e   : > { %v3518_v24 = vadd.f32 %v1097_v23, %v858_v34  ;;  %2265 = vmatprep.mubr.msk.f32.mxu1 %vm392_vm0, %v3301_v31  ;;  %1253 = vrot.lane.b32.xlu1 %v3510_v33, %s2530_s17 }
 0x26f   : > { %v1034_v3 = vpop.permute.xlu0 %1033 }
 0x270   : > { %v1161_v17 = vmax.f32 %v3518_v24, 0.0  ;;  %v1098_v11 = vadd.f32 %v1034_v3, %v3286_v56  ;;  %v1198_v28 = vpop.permute.xlu1 %1197 }
 0x271   : > { %2267 = vmatmul.mubr.msk.f32.gmra.mxu1 %vm2845_vm1, %v1198_v28 }
 0x272   : > { %v3530_v37 = vadd.f32 %v1098_v11, %v938_v32  ;;  %2268 = vmatprep.mubr.msk.f32.mxu1 %vm392_vm0, %v3306_v54  ;;  %1255 = vrot.lane.b32.xlu0 %v1161_v17, %s2530_s17 }
 0x274   : > { %v1162_v43 = vmax.f32 %v3530_v37, 0.0  ;;  %v1200_v27 = vpop.permute.xlu1 %1199 }
 0x275   : > { %v1293_v56 = vsel %vm392_vm0, %v1131_v13, %v1200_v27 }
 0x276   : > { %1460 = vmatmul.mubr.f32.gmra.mxu1 %v1293_v56  ;;  %1257 = vrot.lane.b32.xlu1 %v1162_v43, %s2530_s17 }
 0x277   : > { %2269 = vmatprep.mubr.msk.f32.mxu1 %vm392_vm0, %v3317_v50 }
 0x278   : > { %v1202_v58 = vpop.permute.xlu1 %1201 }
 0x279   : > { %v1294_v8 = vsel %vm392_vm0, %v1132_v57, %v1202_v58 }
 0x27a   : > { %1466 = vmatmul.mubr.f32.gmra.mxu1 %v1294_v8 }
 0x27b   : > { %2270 = vmatprep.mubr.msk.f32.mxu1 %vm392_vm0, %v3322_v36 }
 0x27c   : > { %v1204_v12 = vpop.permute.xlu1 %1203 }
 0x27d   : > { %v1295_v13 = vsel %vm392_vm0, %v3288_v7, %v1204_v12 }
 0x27e   : > { %1472 = vmatmul.mubr.f32.gmra.mxu1 %v1295_v13 }
 0x27f   : > { %2271 = vmatprep.mubr.msk.f32.mxu1 %vm392_vm0, %v3333_v38 }
 0x280   : > { %v1206_v20 = vpop.permute.xlu1 %1205 }
 0x281   : > { %v1296_v19 = vsel %vm392_vm0, %v3301_v31, %v1206_v20 }
 0x282   : > { %1478 = vmatmul.mubr.f32.gmra.mxu1 %v1296_v19 }
 0x283   : > { %2272 = vmatprep.mubr.msk.f32.mxu1 %vm392_vm0, %v3338_v5 }
 0x284   : > { %v1208_v30 = vpop.permute.xlu1 %1207 }
 0x285   : > { %v1297_v57 = vsel %vm392_vm0, %v3306_v54, %v1208_v30 }
 0x286   : > { %1484 = vmatmul.mubr.f32.gmra.mxu1 %v1297_v57 }
 0x287   : > { %2273 = vmatprep.mubr.msk.f32.mxu1 %vm392_vm0, %v3349_v46 }
 0x288   : > { %v1210_v7 = vpop.permute.xlu1 %1209 }
 0x289   : > { %v1298_v53 = vsel %vm392_vm0, %v3317_v50, %v1210_v7 }
 0x28a   : > { %1490 = vmatmul.mubr.f32.gmra.mxu1 %v1298_v53 }
 0x28b   : > { %2274 = vmatprep.mubr.msk.f32.mxu1 %vm392_vm0, %v3354_v14 }
 0x28c   : > { %v1212_v31 = vpop.permute.xlu1 %1211 }
 0x28d   : > { %v1299_v15 = vsel %vm392_vm0, %v3322_v36, %v1212_v31 }
 0x28e   : > { %1496 = vmatmul.mubr.f32.gmra.mxu1 %v1299_v15 }
 0x28f   : > { %2275 = vmatprep.mubr.msk.f32.mxu1 %vm392_vm0, %v3365_v48 }
 0x290   : > { %v1214_v54 = vpop.permute.xlu1 %1213 }
 0x291   : > { %v1300_v1 = vsel %vm392_vm0, %v3333_v38, %v1214_v54 }
 0x292   : > { %1502 = vmatmul.mubr.f32.gmra.mxu1 %v1300_v1 }
 0x293   : > { %2276 = vmatprep.mubr.msk.f32.mxu1 %vm392_vm0, %v3370_v44 }
 0x294   : > { %v1216_v50 = vpop.permute.xlu1 %1215 }
 0x295   : > { %v1301_v45 = vsel %vm392_vm0, %v3338_v5, %v1216_v50 }
 0x296   : > { %1508 = vmatmul.mubr.f32.gmra.mxu1 %v1301_v45 }
 0x297   : > { %2277 = vmatprep.mubr.msk.f32.mxu1 %vm392_vm0, %v3381_v22 }
 0x298   : > { %v1218_v36 = vpop.permute.xlu1 %1217 }
 0x299   : > { %v1302_v9 = vsel %vm392_vm0, %v3349_v46, %v1218_v36 }
 0x29a   : > { %1514 = vmatmul.mubr.f32.gmra.mxu1 %v1302_v9 }
 0x29b   : > { %2278 = vmatprep.mubr.msk.f32.mxu1 %vm392_vm0, %v3386_v29 }
 0x29c   : > { %v1220_v38 = vpop.permute.xlu1 %1219 }
 0x29d   : > { %v1303_v39 = vsel %vm392_vm0, %v3354_v14, %v1220_v38 }
 0x29e   : > { %1520 = vmatmul.mubr.f32.gmra.mxu1 %v1303_v39 }
 0x29f   : > { %2279 = vmatprep.mubr.msk.f32.mxu1 %vm392_vm0, %v3397_v26 }
 0x2a0   : > { %v1222_v5 = vpop.permute.xlu1 %1221 }
 0x2a1   : > { %v1304_v6 = vsel %vm392_vm0, %v3365_v48, %v1222_v5 }
 0x2a2   : > { %1526 = vmatmul.mubr.f32.gmra.mxu1 %v1304_v6 }
 0x2a3   : > { %2280 = vmatprep.mubr.msk.f32.mxu1 %vm392_vm0, %v3402_v16 }
 0x2a4   : > { %v1224_v46 = vpop.permute.xlu1 %1223 }
 0x2a5   : > { %v1305_v52 = vsel %vm392_vm0, %v3370_v44, %v1224_v46 }
 0x2a6   : > { %1532 = vmatmul.mubr.f32.gmra.mxu1 %v1305_v52 }
 0x2a7   : > { %2281 = vmatprep.mubr.msk.f32.mxu1 %vm392_vm0, %v3413_v18 }
 0x2a8   : > { %v1226_v14 = vpop.permute.xlu1 %1225 }
 0x2a9   : > { %v1306_v42 = vsel %vm392_vm0, %v3381_v22, %v1226_v14 }
 0x2aa   : > { %1538 = vmatmul.mubr.f32.gmra.mxu1 %v1306_v42 }
 0x2ab   : > { %2282 = vmatprep.mubr.msk.f32.mxu1 %vm392_vm0, %v3418_v25 }
 0x2ac   : > { %v1228_v48 = vpop.permute.xlu0 %1227 }
 0x2ad   : > { %v1307_v4 = vsel %vm392_vm0, %v3386_v29, %v1228_v48 }
 0x2ae   : > { %1544 = vmatmul.mubr.f32.gmra.mxu1 %v1307_v4 }
 0x2af   : > { %2283 = vmatprep.mubr.msk.f32.mxu1 %vm392_vm0, %v3429_v2 }
 0x2b0   : > { %v1230_v44 = vpop.permute.xlu1 %1229 }
 0x2b1   : > { %v1308_v0 = vsel %vm392_vm0, %v3397_v26, %v1230_v44 }
 0x2b2   : > { %1550 = vmatmul.mubr.f32.gmra.mxu1 %v1308_v0 }
 0x2b3   : > { %2284 = vmatprep.mubr.msk.f32.mxu1 %vm392_vm0, %v3434_v62 }
 0x2b4   : > { %v1232_v22 = vpop.permute.xlu0 %1231 }
 0x2b5   : > { %v1309_v23 = vsel %vm392_vm0, %v3402_v16, %v1232_v22 }
 0x2b6   : > { %1556 = vmatmul.mubr.f32.gmra.mxu1 %v1309_v23 }
 0x2b7   : > { %2285 = vmatprep.mubr.msk.f32.mxu1 %vm392_vm0, %v3445_v59 }
 0x2b8   : > { %v1234_v29 = vpop.permute.xlu1 %1233 }
 0x2b9   : > { %v1310_v61 = vsel %vm392_vm0, %v3413_v18, %v1234_v29 }
 0x2ba   : > { %1562 = vmatmul.mubr.f32.gmra.mxu1 %v1310_v61 }
 0x2bb   : > { %2286 = vmatprep.mubr.msk.f32.mxu1 %vm392_vm0, %v3450_v60 }
 0x2bc   : > { %v1236_v26 = vpop.permute.xlu0 %1235 }
 0x2bd   : > { %v1311_v34 = vsel %vm392_vm0, %v3418_v25, %v1236_v26 }
 0x2be   : > { %1568 = vmatmul.mubr.f32.gmra.mxu1 %v1311_v34 }
 0x2bf   : > { %2287 = vmatprep.mubr.msk.f32.mxu1 %vm392_vm0, %v3461_v51 }
 0x2c0   : > { %v1238_v16 = vpop.permute.xlu1 %1237 }
 0x2c1   : > { %v1312_v63 = vsel %vm392_vm0, %v3429_v2, %v1238_v16 }
 0x2c2   : > { %1574 = vmatmul.mubr.f32.gmra.mxu1 %v1312_v63 }
 0x2c3   : > { %2288 = vmatprep.mubr.msk.f32.mxu1 %vm392_vm0, %v3466_v47 }
 0x2c4   : > { %v1240_v18 = vpop.permute.xlu0 %1239 }
 0x2c5   : > { %v1313_v49 = vsel %vm392_vm0, %v3434_v62, %v1240_v18 }
 0x2c6   : > { %1580 = vmatmul.mubr.f32.gmra.mxu1 %v1313_v49 }
 0x2c7   : > { %2289 = vmatprep.mubr.msk.f32.mxu1 %vm392_vm0, %v3477_v35 }
 0x2c8   : > { %v1242_v25 = vpop.permute.xlu1 %1241 }
 0x2c9   : > { %v1314_v3 = vsel %vm392_vm0, %v3445_v59, %v1242_v25 }
 0x2ca   : > { %1586 = vmatmul.mubr.f32.gmra.mxu1 %v1314_v3 }
 0x2cb   : > { %2290 = vmatprep.mubr.msk.f32.mxu1 %vm392_vm0, %v3482_v10 }
 0x2cc   : > { %v1244_v2 = vpop.permute.xlu0 %1243 }
 0x2cd   : > { %v1315_v11 = vsel %vm392_vm0, %v3450_v60, %v1244_v2 }
 0x2ce   : > { %1592 = vmatmul.mubr.f32.gmra.mxu1 %v1315_v11 }
 0x2cf   : > { %2291 = vmatprep.mubr.msk.f32.mxu1 %vm392_vm0, %v3493_v21 }
 0x2d0   : > { %v1246_v62 = vpop.permute.xlu1 %1245 }
 0x2d1   : > { %v1316_v28 = vsel %vm392_vm0, %v3461_v51, %v1246_v62 }
 0x2d2   : > { %1598 = vmatmul.mubr.f32.gmra.mxu1 %v1316_v28 }
 0x2d3   : > { %2292 = vmatprep.mubr.msk.f32.mxu1 %vm392_vm0, %v3498_v41 }
 0x2d4   : > { %v1248_v59 = vpop.permute.xlu0 %1247 }
 0x2d5   : > { %v1317_v32 = vsel %vm392_vm0, %v3466_v47, %v1248_v59 }
 0x2d6   : > { %1604 = vmatmul.mubr.f32.gmra.mxu1 %v1317_v32 }
 0x2d7   : > { %2293 = vmatprep.mubr.msk.f32.mxu1 %vm392_vm0, %v3510_v33 }
 0x2d8   : > { %v1250_v60 = vpop.permute.xlu1 %1249 }
 0x2d9   : > { %v1318_v27 = vsel %vm392_vm0, %v3477_v35, %v1250_v60  ;;  %v4268_v35 = vmov 0.0  }
 0x2da   : > { %1610 = vmatmul.mubr.f32.gmra.mxu1 %v1318_v27 }
 0x2db   : > { %2294 = vmatprep.mubr.msk.f32.mxu1 %vm392_vm0, %v1161_v17 }
 0x2dc   : > { %v1252_v51 = vpop.permute.xlu0 %1251 }
 0x2dd   : > { %v1319_v56 = vsel %vm392_vm0, %v3482_v10, %v1252_v51 }
 0x2de   : > { %1616 = vmatmul.mubr.f32.gmra.mxu1 %v1319_v56 }
 0x2df   : > { %2295 = vmatprep.mubr.msk.f32.mxu1 %vm392_vm0, %v1162_v43 }
 0x2e0   : > { %v1254_v47 = vpop.permute.xlu1 %1253 }
 0x2e1   : > { %v1320_v58 = vsel %vm392_vm0, %v3493_v21, %v1254_v47 }
 0x2e2   : > { %1622 = vmatmul.mubr.f32.gmra.mxu1 %v1320_v58 }
 0x2e3   : > { %1627 = vmatprep.mubr.f32.mxu1 %v4268_v35 }
 0x2e4   : > { %v1256_v8 = vpop.permute.xlu0 %1255 }
 0x2e5   : > { %v1321_v24 = vsel %vm392_vm0, %v3498_v41, %v1256_v8 }
 0x2e6   : > { %1628 = vmatmul.mubr.f32.gmra.mxu1 %v1321_v24 }
 0x2e7   : > { %1633 = vmatprep.mubr.f32.mxu1 %v4268_v35 }
 0x2e8   : > { %v1258_v10 = vpop.permute.xlu1 %1257 }
 0x2e9   : > { %v1322_v17 = vsel %vm392_vm0, %v3510_v33, %v1258_v10 }
 0x2ea   : > { %1634 = vmatmul.mubr.f32.gmra.mxu1 %v1322_v17 }
 0x32d   : > { %v1449_v37 = vpop.f32.mrf.mxu1 }
 0x32e   : > { %1864 = vrot.lane.b32.xlu0 %v1449_v37, %s2530_s17  ;;  %v1640_v12 = vrot.slane %v1449_v37, 7 }
 0x32f   : > { %v1451_v43 = vpop.f32.mrf.mxu1 }
 0x330   : > { %v1704_v19 = vrot.slane %v1451_v43, 1 }
 0x331   : > { %v1455_v21 = vpop.f32.mrf.mxu1 }
 0x332   : > { %v1656_v13 = vrot.slane %v1455_v21, 7  ;;  %1866 = vrot.lane.b32.xlu1 %v1455_v21, %s2530_s17 }
 0x333   : > { %v1457_v20 = vpop.f32.mrf.mxu1 }
 0x334   : > { %v1720_v41 = vrot.slane %v1457_v20, 1  ;;  %v3665_v30 = vsel %vm777_vm2, %v1656_v13, %v1640_v12  ;;  %v3669_v33 = vsel %vm777_vm2, %v1640_v12, %v1656_v13 }
 0x336   : > { %v1461_v57 = vpop.f32.mrf.mxu1  ;;  %v3673_v7 = vsel %vm842_vm3, %v1704_v19, %v1720_v41  ;;  %v3677_v53 = vsel %vm842_vm3, %v1720_v41, %v1704_v19 }
 0x337   : > { %1868 = vrot.lane.b32.xlu0 %v1461_v57, %s2530_s17  ;;  %v1641_v54 = vrot.slane %v1461_v57, 7 }
 0x338   : > { %v1463_v31 = vpop.f32.mrf.mxu1 }
 0x339   : > { %v1705_v45 = vrot.slane %v1463_v31, 1 }
 0x33a   : > { %v1467_v15 = vpop.f32.mrf.mxu1 }
 0x33b   : > { %v1657_v1 = vrot.slane %v1467_v15, 7  ;;  %1870 = vrot.lane.b32.xlu1 %v1467_v15, %s2530_s17 }
 0x33c   : > { %v1469_v50 = vpop.f32.mrf.mxu1 }
 0x33d   : > { %v1721_v36 = vrot.slane %v1469_v50, 1  ;;  %v3683_v9 = vsel %vm777_vm2, %v1657_v1, %v1641_v54  ;;  %v3687_v38 = vsel %vm777_vm2, %v1641_v54, %v1657_v1 }
 0x33e   : > { %v1473_v39 = vpop.f32.mrf.mxu1 }
 0x33f   : > { %1872 = vrot.lane.b32.xlu0 %v1473_v39, %s2530_s17  ;;  %v3692_v5 = vsel %vm842_vm3, %v1705_v45, %v1721_v36  ;;  %v3696_v6 = vsel %vm842_vm3, %v1721_v36, %v1705_v45  ;;  %v1642_v14 = vrot.slane %v1473_v39, 7 }
 0x340   : > { %v1475_v46 = vpop.f32.mrf.mxu1 }
 0x341   : > { %v1706_v4 = vrot.slane %v1475_v46, 1 }
 0x342   : > { %v1479_v52 = vpop.f32.mrf.mxu1 }
 0x343   : > { %v1658_v42 = vrot.slane %v1479_v52, 7  ;;  %1874 = vrot.lane.b32.xlu1 %v1479_v52, %s2530_s17 }
 0x344   : > { %v1481_v48 = vpop.f32.mrf.mxu1 }
 0x345   : > { %v1722_v44 = vrot.slane %v1481_v48, 1  ;;  %v3701_v0 = vsel %vm777_vm2, %v1658_v42, %v1642_v14  ;;  %v3705_v22 = vsel %vm777_vm2, %v1642_v14, %v1658_v42 }
 0x346   : > { %v1485_v23 = vpop.f32.mrf.mxu1 }
 0x347   : > { %1876 = vrot.lane.b32.xlu0 %v1485_v23, %s2530_s17  ;;  %v3710_v29 = vsel %vm842_vm3, %v1706_v4, %v1722_v44  ;;  %v3714_v61 = vsel %vm842_vm3, %v1722_v44, %v1706_v4  ;;  %v1643_v16 = vrot.slane %v1485_v23, 7 }
 0x348   : > { %v1487_v26 = vpop.f32.mrf.mxu1 }
 0x349   : > { %v1707_v49 = vrot.slane %v1487_v26, 1 }
 0x34a   : > { %v1491_v34 = vpop.f32.mrf.mxu1 }
 0x34b   : > { %v1659_v63 = vrot.slane %v1491_v34, 7  ;;  %1878 = vrot.lane.b32.xlu1 %v1491_v34, %s2530_s17 }
 0x34c   : > { %v1493_v18 = vpop.f32.mrf.mxu1 }
 0x34d   : > { %v1723_v25 = vrot.slane %v1493_v18, 1  ;;  %v3719_v3 = vsel %vm777_vm2, %v1659_v63, %v1643_v16  ;;  %v3723_v2 = vsel %vm777_vm2, %v1643_v16, %v1659_v63 }
 0x34e   : > { %v1497_v11 = vpop.f32.mrf.mxu1 }
 0x34f   : > { %1880 = vrot.lane.b32.xlu0 %v1497_v11, %s2530_s17  ;;  %v3728_v62 = vsel %vm842_vm3, %v1707_v49, %v1723_v25  ;;  %v3732_v28 = vsel %vm842_vm3, %v1723_v25, %v1707_v49  ;;  %v1644_v60 = vrot.slane %v1497_v11, 7 }
 0x350   : > { %v1499_v59 = vpop.f32.mrf.mxu1 }
 0x351   : > { %v1708_v56 = vrot.slane %v1499_v59, 1 }
 0x352   : > { %v1503_v32 = vpop.f32.mrf.mxu1 }
 0x353   : > { %v1660_v27 = vrot.slane %v1503_v32, 7  ;;  %1882 = vrot.lane.b32.xlu1 %v1503_v32, %s2530_s17 }
 0x354   : > { %v1505_v51 = vpop.f32.mrf.mxu1 }
 0x355   : > { %v1724_v47 = vrot.slane %v1505_v51, 1  ;;  %v3737_v58 = vsel %vm777_vm2, %v1660_v27, %v1644_v60  ;;  %v3741_v35 = vsel %vm777_vm2, %v1644_v60, %v1660_v27 }
 0x356   : > { %v1509_v8 = vpop.f32.mrf.mxu1 }
 0x357   : > { %1884 = vrot.lane.b32.xlu0 %v1509_v8, %s2530_s17  ;;  %v3746_v24 = vsel %vm842_vm3, %v1708_v56, %v1724_v47  ;;  %v3750_v10 = vsel %vm842_vm3, %v1724_v47, %v1708_v56  ;;  %v1645_v43 = vrot.slane %v1509_v8, 7 }
 0x358   : > { %v1511_v17 = vpop.f32.mrf.mxu1 }
 0x359   : > { %v1709_v13 = vrot.slane %v1511_v17, 1 }
 0x35a   : > { %v1515_v37 = vpop.f32.mrf.mxu1 }
 0x35b   : > { %v1661_v21 = vrot.slane %v1515_v37, 7  ;;  %1886 = vrot.lane.b32.xlu1 %v1515_v37, %s2530_s17 }
 0x35c   : > { %v1517_v12 = vpop.f32.mrf.mxu1 }
 0x35d   : > { %v1725_v20 = vrot.slane %v1517_v12, 1  ;;  %v3755_v19 = vsel %vm777_vm2, %v1661_v21, %v1645_v43  ;;  %v3759_v41 = vsel %vm777_vm2, %v1645_v43, %v1661_v21 }
 0x35e   : > { %v1521_v57 = vpop.f32.mrf.mxu1 }
 0x35f   : > { %1888 = vrot.lane.b32.xlu0 %v1521_v57, %s2530_s17  ;;  %v3764_v31 = vsel %vm842_vm3, %v1709_v13, %v1725_v20  ;;  %v3768_v15 = vsel %vm842_vm3, %v1725_v20, %v1709_v13  ;;  %v1646_v50 = vrot.slane %v1521_v57, 7 }
 0x360   : > { %v1523_v54 = vpop.f32.mrf.mxu1 }
 0x361   : > { %v1710_v39 = vrot.slane %v1523_v54, 1 }
 0x362   : > { %v1527_v1 = vpop.f32.mrf.mxu1 }
 0x363   : > { %v1662_v45 = vrot.slane %v1527_v1, 7  ;;  %1890 = vrot.lane.b32.xlu1 %v1527_v1, %s2530_s17 }
 0x364   : > { %v1529_v36 = vpop.f32.mrf.mxu1 }
 0x365   : > { %v1726_v46 = vrot.slane %v1529_v36, 1  ;;  %v3773_v52 = vsel %vm777_vm2, %v1662_v45, %v1646_v50  ;;  %v3777_v14 = vsel %vm777_vm2, %v1646_v50, %v1662_v45 }
 0x366   : > { %v1533_v42 = vpop.f32.mrf.mxu1 }
 0x367   : > { %1892 = vrot.lane.b32.xlu0 %v1533_v42, %s2530_s17  ;;  %v3782_v48 = vsel %vm842_vm3, %v1710_v39, %v1726_v46  ;;  %v3786_v4 = vsel %vm842_vm3, %v1726_v46, %v1710_v39  ;;  %v1647_v26 = vrot.slane %v1533_v42, 7 }
 0x368   : > { %v1535_v44 = vpop.f32.mrf.mxu1 }
 0x369   : > { %v1711_v63 = vrot.slane %v1535_v44, 1 }
 0x36a   : > { %v1539_v23 = vpop.f32.mrf.mxu1 }
 0x36b   : > { %v1663_v34 = vrot.slane %v1539_v23, 7  ;;  %1894 = vrot.lane.b32.xlu1 %v1539_v23, %s2530_s17 }
 0x36c   : > { %v1541_v16 = vpop.f32.mrf.mxu1 }
 0x36d   : > { %v1727_v18 = vrot.slane %v1541_v16, 1  ;;  %v3791_v49 = vsel %vm777_vm2, %v1663_v34, %v1647_v26  ;;  %v3795_v25 = vsel %vm777_vm2, %v1647_v26, %v1663_v34 }
 0x36e   : > { %v1545_v11 = vpop.f32.mrf.mxu1 }
 0x36f   : > { %1896 = vrot.lane.b32.xlu0 %v1545_v11, %s2530_s17  ;;  %v3800_v59 = vsel %vm842_vm3, %v1711_v63, %v1727_v18  ;;  %v3804_v32 = vsel %vm842_vm3, %v1727_v18, %v1711_v63  ;;  %v1648_v51 = vrot.slane %v1545_v11, 7 }
 0x370   : > { %v1547_v60 = vpop.f32.mrf.mxu1 }
 0x371   : > { %v1712_v8 = vrot.slane %v1547_v60, 1 }
 0x372   : > { %v1551_v27 = vpop.f32.mrf.mxu1 }
 0x373   : > { %v1664_v56 = vrot.slane %v1551_v27, 7  ;;  %1898 = vrot.lane.b32.xlu1 %v1551_v27, %s2530_s17 }
 0x374   : > { %v1553_v47 = vpop.f32.mrf.mxu1 }
 0x375   : > { %v1728_v17 = vrot.slane %v1553_v47, 1  ;;  %v3809_v37 = vsel %vm777_vm2, %v1664_v56, %v1648_v51  ;;  %v3813_v43 = vsel %vm777_vm2, %v1648_v51, %v1664_v56 }
 0x376   : > { %v1557_v21 = vpop.f32.mrf.mxu1 }
 0x377   : > { %1900 = vrot.lane.b32.xlu0 %v1557_v21, %s2530_s17  ;;  %v3818_v12 = vsel %vm842_vm3, %v1712_v8, %v1728_v17  ;;  %v3822_v13 = vsel %vm842_vm3, %v1728_v17, %v1712_v8  ;;  %v1649_v54 = vrot.slane %v1557_v21, 7 }
 0x378   : > { %v1559_v20 = vpop.f32.mrf.mxu1 }
 0x379   : > { %v1713_v45 = vrot.slane %v1559_v20, 1 }
 0x37a   : > { %v1563_v57 = vpop.f32.mrf.mxu1 }
 0x37b   : > { %v1665_v1 = vrot.slane %v1563_v57, 7  ;;  %1902 = vrot.lane.b32.xlu1 %v1563_v57, %s2530_s17 }
 0x37c   : > { %v1565_v50 = vpop.f32.mrf.mxu1 }
 0x37d   : > { %v1729_v36 = vrot.slane %v1565_v50, 1  ;;  %v3827_v39 = vsel %vm777_vm2, %v1665_v1, %v1649_v54  ;;  %v3831_v46 = vsel %vm777_vm2, %v1649_v54, %v1665_v1 }
 0x37e   : > { %v1569_v42 = vpop.f32.mrf.mxu1 }
 0x37f   : > { %1904 = vrot.lane.b32.xlu0 %v1569_v42, %s2530_s17  ;;  %v3836_v44 = vsel %vm842_vm3, %v1713_v45, %v1729_v36  ;;  %v3840_v23 = vsel %vm842_vm3, %v1729_v36, %v1713_v45  ;;  %v1650_v16 = vrot.slane %v1569_v42, 7 }
 0x380   : > { %v1571_v26 = vpop.f32.mrf.mxu1 }
 0x381   : > { %v1714_v11 = vrot.slane %v1571_v26, 1 }
 0x382   : > { %v1575_v34 = vpop.f32.mrf.mxu1 }
 0x383   : > { %v1666_v63 = vrot.slane %v1575_v34, 7  ;;  %1906 = vrot.lane.b32.xlu1 %v1575_v34, %s2530_s17 }
 0x384   : > { %v1577_v18 = vpop.f32.mrf.mxu1 }
 0x385   : > { %v1730_v60 = vrot.slane %v1577_v18, 1  ;;  %v3845_v27 = vsel %vm777_vm2, %v1666_v63, %v1650_v16  ;;  %v3849_v51 = vsel %vm777_vm2, %v1650_v16, %v1666_v63 }
 0x386   : > { %v1581_v56 = vpop.f32.mrf.mxu1 }
 0x387   : > { %1908 = vrot.lane.b32.xlu0 %v1581_v56, %s2530_s17  ;;  %v3854_v47 = vsel %vm842_vm3, %v1714_v11, %v1730_v60  ;;  %v3858_v8 = vsel %vm842_vm3, %v1730_v60, %v1714_v11  ;;  %v1651_v20 = vrot.slane %v1581_v56, 7 }
 0x388   : > { %v1583_v17 = vpop.f32.mrf.mxu1 }
 0x389   : > { %v1715_v1 = vrot.slane %v1583_v17, 1 }
 0x38a   : > { %v1587_v21 = vpop.f32.mrf.mxu1 }
 0x38b   : > { %v1667_v57 = vrot.slane %v1587_v21, 7  ;;  %1910 = vrot.lane.b32.xlu1 %v1587_v21, %s2530_s17 }
 0x38c   : > { %v1589_v54 = vpop.f32.mrf.mxu1 }
 0x38d   : > { %v1731_v50 = vrot.slane %v1589_v54, 1  ;;  %v3863_v45 = vsel %vm777_vm2, %v1667_v57, %v1651_v20  ;;  %v3867_v36 = vsel %vm777_vm2, %v1651_v20, %v1667_v57 }
 0x38e   : > { %v1593_v42 = vpop.f32.mrf.mxu1 }
 0x38f   : > { %1912 = vrot.lane.b32.xlu0 %v1593_v42, %s2530_s17  ;;  %v3872_v26 = vsel %vm842_vm3, %v1715_v1, %v1731_v50  ;;  %v3876_v34 = vsel %vm842_vm3, %v1731_v50, %v1715_v1  ;;  %v1652_v18 = vrot.slane %v1593_v42, 7 }
 0x390   : > { %4269 = vst [vmem:[#allocation12_spill] sm:$0xff] %v3876_v34  ;;  %v1595_v16 = vpop.f32.mrf.mxu1 }
 0x391   : > { %v1716_v56 = vrot.slane %v1595_v16, 1 }
 0x392   : > { %v1599_v63 = vpop.f32.mrf.mxu1 }
 0x393   : > { %v1668_v11 = vrot.slane %v1599_v63, 7  ;;  %1914 = vrot.lane.b32.xlu1 %v1599_v63, %s2530_s17 }
 0x394   : > { %v1601_v60 = vpop.f32.mrf.mxu1 }
 0x395   : > { %v1732_v17 = vrot.slane %v1601_v60, 1  ;;  %v3881_v21 = vsel %vm777_vm2, %v1668_v11, %v1652_v18  ;;  %v3885_v20 = vsel %vm777_vm2, %v1652_v18, %v1668_v11 }
 0x396   : > { %4270 = vst [vmem:[#allocation14_spill] sm:$0xff] %v3881_v21  ;;  %4271 = vst [vmem:[#allocation13_spill] sm:$0xff] %v3885_v20  ;;  %v1605_v57 = vpop.f32.mrf.mxu1 }
 0x397   : > { %1916 = vrot.lane.b32.xlu0 %v1605_v57, %s2530_s17  ;;  %v3890_v54 = vsel %vm842_vm3, %v1716_v56, %v1732_v17  ;;  %v3894_v1 = vsel %vm842_vm3, %v1732_v17, %v1716_v56  ;;  %v1653_v16 = vrot.slane %v1605_v57, 7  ;;  %v1768_v57 = vsel %vm260_vm4, %v3665_v30, 0.0 }
 0x398   : > { %4272 = vst [vmem:[#allocation15_spill] sm:$0xff] %v3890_v54  ;;  %4273 = vst [vmem:[#allocation16_spill] sm:$0xff] %v3894_v1  ;;  %v1607_v50 = vpop.f32.mrf.mxu1 }
 0x399   : > { %v1717_v18 = vrot.slane %v1607_v50, 1 }
 0x39a   : > { %v1611_v42 = vpop.f32.mrf.mxu1 }
 0x39b   : > { %v1669_v63 = vrot.slane %v1611_v42, 7  ;;  %1918 = vrot.lane.b32.xlu1 %v1611_v42, %s2530_s17 }
 0x39c   : > { %v1613_v60 = vpop.f32.mrf.mxu1 }
 0x39d   : > { %v1733_v11 = vrot.slane %v1613_v60, 1  ;;  %v3899_v20 = vsel %vm777_vm2, %v1669_v63, %v1653_v16  ;;  %v3903_v54 = vsel %vm777_vm2, %v1653_v16, %v1669_v63 }
 0x39e   : > { %4274 = vst [vmem:[#allocation18_spill] sm:$0xff] %v3899_v20  ;;  %4275 = vst [vmem:[#allocation17_spill] sm:$0xff] %v3903_v54  ;;  %v1617_v21 = vpop.f32.mrf.mxu1 }
 0x39f   : > { %1920 = vrot.lane.b32.xlu0 %v1617_v21, %s2530_s17  ;;  %v3908_v56 = vsel %vm842_vm3, %v1717_v18, %v1733_v11  ;;  %v3912_v17 = vsel %vm842_vm3, %v1733_v11, %v1717_v18  ;;  %v1654_v63 = vrot.slane %v1617_v21, 7  ;;  %v1801_v21 = vsel %vm263_vm5, %v3677_v53, 0.0 }
 0x3a0   : > { %4276 = vst [vmem:[#allocation19_spill] sm:$0xff] %v3908_v56  ;;  %4277 = vst [vmem:[#allocation20_spill] sm:$0xff] %v3912_v17  ;;  %v1865_v50 = vpop.permute.xlu0 %1864  ;;  %v1619_v42 = vpop.f32.mrf.mxu1 }
 0x3a1   : > { %v1960_v60 = vadd.f32 %v1865_v50, %v1768_v57  ;;  %v1718_v56 = vrot.slane %v1619_v42, 1  ;;  %v2368_v50 = vld [vmem:[%s2672_s24] sm:$0xff] }
 0x3a2   : > { %v1623_v16 = vpop.f32.mrf.mxu1 }
 0x3a3   : > { %v1992_v54 = vadd.f32 %v1960_v60, %v3673_v7  ;;  %v1670_v20 = vrot.slane %v1623_v16, 7  ;;  %1922 = vrot.lane.b32.xlu1 %v1623_v16, %s2530_s17 }
 0x3a4   : > { %v1867_v1 = vpop.permute.xlu1 %1866  ;;  %v1625_v18 = vpop.f32.mrf.mxu1 }
 0x3a5   : > { %v2024_v11 = vmul.f32 0.1, %v1992_v54  ;;  %v1961_v17 = vadd.f32 %v1867_v1, %v3669_v33  ;;  %v1734_v34 = vrot.slane %v1625_v18, 1  ;;  %v3922_v30 = vsel %vm777_vm2, %v1670_v20, %v1654_v63  ;;  %v2369_v18 = vld [vmem:[%s2672_s24 + $0x8] sm:$0xff] }
 0x3a6   : > { %v1629_v7 = vpop.f32.mrf.mxu1  ;;  %v3929_v57 = vsel %vm777_vm2, %v1654_v63, %v1670_v20 }
 0x3a7   : > { %v2056_v42 = vadd.f32 %v2368_v50, %v2024_v11  ;;  %v1993_v54 = vadd.f32 %v1961_v17, %v1801_v21  ;;  %1924 = vrot.lane.b32.xlu0 %v1629_v7, %s2530_s17  ;;  %v3935_v33 = vsel %vm842_vm3, %v1718_v56, %v1734_v34  ;;  %v3941_v53 = vsel %vm842_vm3, %v1734_v34, %v1718_v56 }
 0x3a8   : > { %v3937_v1 = vpop.f32.mrf.mxu1  ;;  %v1770_v17 = vsel %vm260_vm4, %v3683_v9, 0.0  ;;  %v1655_v34 = vrot.slane %v1629_v7, 7 }
 0x3a9   : > { %2088 = vst.msk [vmem:[%s3945_s15] sm:$0xff] %vm392_vm0, %v2056_v42  ;;  %v2025_v20 = vmul.f32 0.1, %v1993_v54  ;;  %v1869_v60 = vpop.permute.xlu0 %1868 }
 0x3aa   : > { %v1962_v16 = vadd.f32 %v1869_v60, %v1770_v17  ;;  %v1635_v63 = vpop.f32.mrf.mxu1 }
 0x3ab   : > { %v2057_v11 = vadd.f32 %v2369_v18, %v2025_v20  ;;  %v1671_v56 = vrot.slane %v1635_v63, 7  ;;  %1926 = vrot.lane.b32.xlu1 %v1635_v63, %s2530_s17  ;;  %v2370_v20 = vld [vmem:[%s2672_s24 + $0x10] sm:$0xff] }
 0x3ac   : > { %v1994_v21 = vadd.f32 %v1962_v16, %v3692_v5  ;;  %v1803_v5 = vsel %vm263_vm5, %v3696_v6, 0.0  ;;  %v1772_v16 = vsel %vm260_vm4, %v3701_v0, 0.0  ;;  %v1805_v0 = vsel %vm263_vm5, %v3714_v61, 0.0 }
 0x3ad   : > { %2089 = vst.msk [vmem:[%s3945_s15 + $0x8] sm:$0xff] %vm392_vm0, %v2057_v11  ;;  %v1871_v50 = vpop.permute.xlu1 %1870  ;;  %v3959_v9 = vsel %vm777_vm2, %v1671_v56, %v1655_v34  ;;  %v3963_v42 = vsel %vm777_vm2, %v1655_v34, %v1671_v56  ;;  %v2371_v34 = vld [vmem:[%s2672_s24 + $0x18] sm:$0xff] }
 0x3ae   : > { %v2026_v7 = vmul.f32 0.1, %v1994_v21  ;;  %v1963_v54 = vadd.f32 %v1871_v50, %v3687_v38 }
 0x3b0   : > { %v2058_v17 = vadd.f32 %v2370_v20, %v2026_v7  ;;  %v1995_v60 = vadd.f32 %v1963_v54, %v1803_v5  ;;  %v2372_v7 = vld [vmem:[%s2672_s24 + $0x20] sm:$0xff]  ;;  %v1774_v20 = vsel %vm260_vm4, %v3719_v3, 0.0  ;;  %v1807_v3 = vsel %vm263_vm5, %v3732_v28, 0.0 }
 0x3b1   : > { %v1873_v63 = vpop.permute.xlu0 %1872 }
 0x3b2   : > { %2090 = vst.msk [vmem:[%s3945_s15 + $0x10] sm:$0xff] %vm392_vm0, %v2058_v17  ;;  %v2027_v18 = vmul.f32 0.1, %v1995_v60  ;;  %v1964_v11 = vadd.f32 %v1873_v63, %v1772_v16  ;;  %v2373_v16 = vld [vmem:[%s2672_s24 + $0x28] sm:$0xff] }
 0x3b4   : > { %v2059_v38 = vadd.f32 %v2371_v34, %v2027_v18  ;;  %v1996_v56 = vadd.f32 %v1964_v11, %v3710_v29  ;;  %v2374_v34 = vld [vmem:[%s2672_s24 + $0x30] sm:$0xff] }
 0x3b5   : > { %v1875_v6 = vpop.permute.xlu1 %1874 }
 0x3b6   : > { %2091 = vst.msk [vmem:[%s3945_s15 + $0x18] sm:$0xff] %vm392_vm0, %v2059_v38  ;;  %v2028_v21 = vmul.f32 0.1, %v1996_v56  ;;  %v1965_v50 = vadd.f32 %v1875_v6, %v3705_v22  ;;  %v1776_v6 = vsel %vm260_vm4, %v3737_v58, 0.0  ;;  %v1809_v58 = vsel %vm263_vm5, %v3750_v10, 0.0 }
 0x3b8   : > { %v2060_v54 = vadd.f32 %v2372_v7, %v2028_v21  ;;  %v1997_v5 = vadd.f32 %v1965_v50, %v1805_v0  ;;  %v2375_v0 = vld [vmem:[%s2672_s24 + $0x38] sm:$0xff] }
 0x3b9   : > { %v1877_v29 = vpop.permute.xlu0 %1876 }
 0x3ba   : > { %2092 = vst.msk [vmem:[%s3945_s15 + $0x20] sm:$0xff] %vm392_vm0, %v2060_v54  ;;  %v2029_v17 = vmul.f32 0.1, %v1997_v5  ;;  %v1966_v60 = vadd.f32 %v1877_v29, %v1774_v20  ;;  %v2376_v20 = vld [vmem:[%s2672_s24 + $0x40] sm:$0xff] }
 0x3bc   : > { %v2061_v22 = vadd.f32 %v2373_v16, %v2029_v17  ;;  %v1998_v63 = vadd.f32 %v1966_v60, %v3728_v62  ;;  %v1778_v60 = vsel %vm260_vm4, %v3755_v19, 0.0  ;;  %v1811_v19 = vsel %vm263_vm5, %v3768_v15, 0.0 }
 0x3bd   : > { %v1879_v61 = vpop.permute.xlu1 %1878 }
 0x3be   : > { %2093 = vst.msk [vmem:[%s3945_s15 + $0x28] sm:$0xff] %vm392_vm0, %v2061_v22  ;;  %v2030_v18 = vmul.f32 0.1, %v1998_v63  ;;  %v1967_v11 = vadd.f32 %v1879_v61, %v3723_v2  ;;  %v2377_v63 = vld [vmem:[%s2672_s24 + $0x48] sm:$0xff] }
 0x3c0   : > { %v2062_v38 = vadd.f32 %v2374_v34, %v2030_v18  ;;  %v1999_v56 = vadd.f32 %v1967_v11, %v1807_v3  ;;  %v2378_v3 = vld [vmem:[%s2672_s24 + $0x50] sm:$0xff] }
 0x3c1   : > { %v1881_v62 = vpop.permute.xlu0 %1880 }
 0x3c2   : > { %2094 = vst.msk [vmem:[%s3945_s15 + $0x30] sm:$0xff] %vm392_vm0, %v2062_v38  ;;  %v2031_v21 = vmul.f32 0.1, %v1999_v56  ;;  %v1968_v50 = vadd.f32 %v1881_v62, %v1776_v6  ;;  %v1780_v56 = vsel %vm260_vm4, %v3773_v52, 0.0  ;;  %v1813_v52 = vsel %vm263_vm5, %v3786_v4, 0.0 }
 0x3c4   : > { %v2063_v2 = vadd.f32 %v2375_v0, %v2031_v21  ;;  %v2000_v7 = vadd.f32 %v1968_v50, %v3746_v24  ;;  %v2379_v21 = vld [vmem:[%s2672_s24 + $0x58] sm:$0xff] }
 0x3c5   : > { %v1883_v28 = vpop.permute.xlu1 %1882 }
 0x3c6   : > { %2095 = vst.msk [vmem:[%s3945_s15 + $0x38] sm:$0xff] %vm392_vm0, %v2063_v2  ;;  %v2032_v54 = vmul.f32 0.1, %v2000_v7  ;;  %v1969_v5 = vadd.f32 %v1883_v28, %v3741_v35  ;;  %v2380_v7 = vld [vmem:[%s2672_s24 + $0x60] sm:$0xff] }
 0x3c8   : > { %v2064_v29 = vadd.f32 %v2376_v20, %v2032_v54  ;;  %v2001_v17 = vadd.f32 %v1969_v5, %v1809_v58  ;;  %v1782_v5 = vsel %vm260_vm4, %v3791_v49, 0.0  ;;  %v1815_v49 = vsel %vm263_vm5, %v3804_v32, 0.0 }
 0x3c9   : > { %v1885_v24 = vpop.permute.xlu0 %1884 }
 0x3ca   : > { %2096 = vst.msk [vmem:[%s3945_s15 + $0x40] sm:$0xff] %vm392_vm0, %v2064_v29  ;;  %v2033_v16 = vmul.f32 0.1, %v2001_v17  ;;  %v1970_v22 = vadd.f32 %v1885_v24, %v1778_v60  ;;  %v2381_v29 = vld [vmem:[%s2672_s24 + $0x68] sm:$0xff] }
 0x3cc   : > { %v2065_v35 = vadd.f32 %v2377_v63, %v2033_v16  ;;  %v2002_v61 = vadd.f32 %v1970_v22, %v3764_v31  ;;  %v2382_v16 = vld [vmem:[%s2672_s24 + $0x70] sm:$0xff] }
 0x3cd   : > { %v1887_v10 = vpop.permute.xlu1 %1886 }
 0x3ce   : > { %2097 = vst.msk [vmem:[%s3945_s15 + $0x48] sm:$0xff] %vm392_vm0, %v2065_v35  ;;  %v2034_v18 = vmul.f32 0.1, %v2002_v61  ;;  %v1971_v11 = vadd.f32 %v1887_v10, %v3759_v41  ;;  %v1784_v35 = vsel %vm260_vm4, %v3809_v37, 0.0  ;;  %v1817_v37 = vsel %vm263_vm5, %v3822_v13, 0.0 }
 0x3d0   : > { %v2066_v34 = vadd.f32 %v2378_v3, %v2034_v18  ;;  %v2003_v38 = vadd.f32 %v1971_v11, %v1811_v19  ;;  %v2383_v18 = vld [vmem:[%s2672_s24 + $0x78] sm:$0xff] }
 0x3d1   : > { %v1889_v31 = vpop.permute.xlu0 %1888 }
 0x3d2   : > { %2098 = vst.msk [vmem:[%s3945_s15 + $0x50] sm:$0xff] %vm392_vm0, %v2066_v34  ;;  %v2035_v6 = vmul.f32 0.1, %v2003_v38  ;;  %v1972_v62 = vadd.f32 %v1889_v31, %v1780_v56  ;;  %v2384_v34 = vld [vmem:[%s2672_s24 + $0x80] sm:$0xff]  ;;  %v1786_v31 = vsel %vm260_vm4, %v3827_v39, 0.0  ;;  %v1819_v39 = vsel %vm263_vm5, %v3840_v23, 0.0 }
 0x3d4   : > { %v2067_v41 = vadd.f32 %v2379_v21, %v2035_v6  ;;  %v2004_v50 = vadd.f32 %v1972_v62, %v3782_v48  ;;  %v2385_v21 = vld [vmem:[%s2672_s24 + $0x88] sm:$0xff] }
 0x3d5   : > { %v1891_v15 = vpop.permute.xlu1 %1890 }
 0x3d6   : > { %2099 = vst.msk [vmem:[%s3945_s15 + $0x58] sm:$0xff] %vm392_vm0, %v2067_v41  ;;  %v2036_v0 = vmul.f32 0.1, %v2004_v50  ;;  %v1973_v2 = vadd.f32 %v1891_v15, %v3777_v14 }
 0x3d8   : > { %v2068_v28 = vadd.f32 %v2380_v7, %v2036_v0  ;;  %v2005_v54 = vadd.f32 %v1973_v2, %v1813_v52  ;;  %v2386_v0 = vld [vmem:[%s2672_s24 + $0x90] sm:$0xff]  ;;  %v1788_v7 = vsel %vm260_vm4, %v3845_v27, 0.0  ;;  %v1821_v27 = vsel %vm263_vm5, %v3858_v8, 0.0 }
 0x3d9   : > { %v1893_v48 = vpop.permute.xlu0 %1892 }
 0x3da   : > { %2100 = vst.msk [vmem:[%s3945_s15 + $0x60] sm:$0xff] %vm392_vm0, %v2068_v28  ;;  %v2037_v58 = vmul.f32 0.1, %v2005_v54  ;;  %v1974_v20 = vadd.f32 %v1893_v48, %v1782_v5  ;;  %v2387_v5 = vld [vmem:[%s2672_s24 + $0x98] sm:$0xff] }
 0x3dc   : > { %v2069_v14 = vadd.f32 %v2381_v29, %v2037_v58  ;;  %v2006_v17 = vadd.f32 %v1974_v20, %v3800_v59  ;;  %v2388_v29 = vld [vmem:[%s2672_s24 + $0xa0] sm:$0xff] }
 0x3dd   : > { %v1895_v4 = vpop.permute.xlu1 %1894 }
 0x3de   : > { %2101 = vst.msk [vmem:[%s3945_s15 + $0x68] sm:$0xff] %vm392_vm0, %v2069_v14  ;;  %v2038_v60 = vmul.f32 0.1, %v2006_v17  ;;  %v1975_v24 = vadd.f32 %v1895_v4, %v3795_v25  ;;  %v1790_v4 = vsel %vm260_vm4, %v3863_v45, 0.0 }
 0x3e0   : > { %v2070_v22 = vadd.f32 %v2382_v16, %v2038_v60  ;;  %v2007_v63 = vadd.f32 %v1975_v24, %v1815_v49  ;;  %v2389_v49 = vld [vmem:[%s2672_s24 + $0xa8] sm:$0xff] }
 0x3e1   : > { %v1897_v59 = vpop.permute.xlu0 %1896 }
 0x3e2   : > { %2102 = vst.msk [vmem:[%s3945_s15 + $0x70] sm:$0xff] %vm392_vm0, %v2070_v22  ;;  %v2039_v61 = vmul.f32 0.1, %v2007_v63  ;;  %v1976_v10 = vadd.f32 %v1897_v59, %v1784_v35  ;;  %v4278_v35 = vld [vmem:[#allocation12_spill] sm:$0xff]  ;;  %v2390_v59 = vld [vmem:[%s2672_s24 + $0xb0] sm:$0xff] }
 0x3e3   : > { %v1823_v45 = vsel %vm263_vm5, %v4278_v35, 0.0 }
 0x3e4   : > { %v2071_v25 = vadd.f32 %v2383_v18, %v2039_v61  ;;  %v2008_v11 = vadd.f32 %v1976_v10, %v3818_v12  ;;  %v4279_v18 = vld [vmem:[#allocation14_spill] sm:$0xff] }
 0x3e5   : > { %v1899_v32 = vpop.permute.xlu1 %1898 }
 0x3e6   : > { %2103 = vst.msk [vmem:[%s3945_s15 + $0x78] sm:$0xff] %vm392_vm0, %v2071_v25  ;;  %v2040_v19 = vmul.f32 0.1, %v2008_v11  ;;  %v1977_v3 = vadd.f32 %v1899_v32, %v3813_v43  ;;  %v1792_v25 = vsel %vm260_vm4, %v4279_v18, 0.0 }
 0x3e8   : > { %v2072_v38 = vadd.f32 %v2384_v34, %v2040_v19  ;;  %v2009_v56 = vadd.f32 %v1977_v3, %v1817_v37  ;;  %v2391_v19 = vld [vmem:[%s2672_s24 + $0xb8] sm:$0xff]  ;;  %v4280_v3 = vld [vmem:[#allocation15_spill] sm:$0xff] }
 0x3e9   : > { %v1901_v12 = vpop.permute.xlu0 %1900 }
 0x3ea   : > { %2104 = vst.msk [vmem:[%s3945_s15 + $0x80] sm:$0xff] %vm392_vm0, %v2072_v38  ;;  %v2041_v6 = vmul.f32 0.1, %v2009_v56  ;;  %v1978_v62 = vadd.f32 %v1901_v12, %v1786_v31  ;;  %v4281_v56 = vld [vmem:[#allocation13_spill] sm:$0xff]  ;;  %v4282_v12 = vld [vmem:[#allocation16_spill] sm:$0xff] }
 0x3ec   : > { %v2073_v43 = vadd.f32 %v2385_v21, %v2041_v6  ;;  %v2010_v41 = vadd.f32 %v1978_v62, %v3836_v44  ;;  %v1825_v6 = vsel %vm263_vm5, %v4282_v12, 0.0  ;;  %v2392_v62 = vld [vmem:[%s2672_s24 + $0xc0] sm:$0xff] }
 0x3ed   : > { %v1903_v13 = vpop.permute.xlu1 %1902 }
 0x3ee   : > { %2105 = vst.msk [vmem:[%s3945_s15 + $0x88] sm:$0xff] %vm392_vm0, %v2073_v43  ;;  %v2042_v50 = vmul.f32 0.1, %v2010_v41  ;;  %v1979_v15 = vadd.f32 %v1903_v13, %v3831_v46  ;;  %v4283_v41 = vld [vmem:[#allocation18_spill] sm:$0xff] }
 0x3ef   : > { %v1794_v13 = vsel %vm260_vm4, %v4283_v41, 0.0 }
 0x3f0   : > { %v2074_v2 = vadd.f32 %v2386_v0, %v2042_v50  ;;  %v2011_v52 = vadd.f32 %v1979_v15, %v1819_v39  ;;  %v2393_v0 = vld [vmem:[%s2672_s24 + $0xc8] sm:$0xff] }
 0x3f1   : > { %v1905_v44 = vpop.permute.xlu0 %1904 }
 0x3f2   : > { %2106 = vst.msk [vmem:[%s3945_s15 + $0x90] sm:$0xff] %vm392_vm0, %v2074_v2  ;;  %v2043_v28 = vmul.f32 0.1, %v2011_v52  ;;  %v1980_v54 = vadd.f32 %v1905_v44, %v1788_v7  ;;  %v4284_v52 = vld [vmem:[#allocation19_spill] sm:$0xff] }
 0x3f4   : > { %v2075_v46 = vadd.f32 %v2387_v5, %v2043_v28  ;;  %v2012_v48 = vadd.f32 %v1980_v54, %v3854_v47  ;;  %v4285_v54 = vld [vmem:[#allocation17_spill] sm:$0xff] }
 0x3f5   : > { %v1907_v23 = vpop.permute.xlu1 %1906 }
 0x3f6   : > { %2107 = vst.msk [vmem:[%s3945_s15 + $0x98] sm:$0xff] %vm392_vm0, %v2075_v46  ;;  %v2044_v58 = vmul.f32 0.1, %v2012_v48  ;;  %v1981_v20 = vadd.f32 %v1907_v23, %v3849_v51  ;;  %v4286_v46 = vld [vmem:[#allocation20_spill] sm:$0xff]  ;;  %v2394_v23 = vld [vmem:[%s2672_s24 + $0xd0] sm:$0xff] }
 0x3f7   : > { %v1827_v48 = vsel %vm263_vm5, %v4286_v46, 0.0 }
 0x3f8   : > { %v2076_v14 = vadd.f32 %v2388_v29, %v2044_v58  ;;  %v2013_v17 = vadd.f32 %v1981_v20, %v1821_v27  ;;  %v1796_v29 = vsel %vm260_vm4, %v3922_v30, 0.0  ;;  %v1829_v30 = vsel %vm263_vm5, %v3941_v53, 0.0 }
 0x3f9   : > { %v1909_v47 = vpop.permute.xlu0 %1908 }
 0x3fa   : > { %2108 = vst.msk [vmem:[%s3945_s15 + $0xa0] sm:$0xff] %vm392_vm0, %v2076_v14  ;;  %v2045_v60 = vmul.f32 0.1, %v2013_v17  ;;  %v1982_v24 = vadd.f32 %v1909_v47, %v1790_v4  ;;  %v1637_v4 = vpop.f32.mrf.mxu1  ;;  %v2395_v47 = vld [vmem:[%s2672_s24 + $0xd8] sm:$0xff] }
 0x3fc   : > { %v2077_v51 = vadd.f32 %v2389_v49, %v2045_v60  ;;  %v2014_v16 = vadd.f32 %v1982_v24, %v3872_v26 }
 0x3fd   : > { %v1911_v8 = vpop.permute.xlu1 %1910 }
 0x3fe   : > { %2109 = vst.msk [vmem:[%s3945_s15 + $0xa8] sm:$0xff] %vm392_vm0, %v2077_v51  ;;  %v2046_v22 = vmul.f32 0.1, %v2014_v16  ;;  %v1983_v63 = vadd.f32 %v1911_v8, %v3867_v36  ;;  %v1735_v8 = vrot.slane %v1637_v4, 1 }
 0x400   : > { %v2078_v61 = vadd.f32 %v2390_v59, %v2046_v22  ;;  %v2015_v10 = vadd.f32 %v1983_v63, %v1823_v45  ;;  %v2396_v22 = vld [vmem:[%s2672_s24 + $0xe0] sm:$0xff]  ;;  %v1719_v45 = vrot.slane %v3937_v1, 1  ;;  %v1798_v59 = vsel %vm260_vm4, %v3959_v9, 0.0  ;;  %v2397_v1 = vld [vmem:[%s2672_s24 + $0xe8] sm:$0xff] }
 0x401   : > { %v1913_v26 = vpop.permute.xlu0 %1912 }
 0x402   : > { %2110 = vst.msk [vmem:[%s3945_s15 + $0xb0] sm:$0xff] %vm392_vm0, %v2078_v61  ;;  %v2047_v11 = vmul.f32 0.1, %v2015_v10  ;;  %v1984_v32 = vadd.f32 %v1913_v26, %v1792_v25  ;;  %v1751_v53 = vsel %vm842_vm3, %v1719_v45, %v1735_v8  ;;  %v1767_v10 = vsel %vm842_vm3, %v1735_v8, %v1719_v45 }
 0x404   : > { %v2079_v36 = vadd.f32 %v2391_v19, %v2047_v11  ;;  %v2016_v37 = vadd.f32 %v1984_v32, %v4280_v3  ;;  %v1831_v32 = vsel %vm263_vm5, %v1767_v10, 0.0  ;;  %v2398_v19 = vld [vmem:[%s2672_s24 + $0xf0] sm:$0xff] }
 0x405   : > { %v1915_v34 = vpop.permute.xlu1 %1914 }
 0x406   : > { %2111 = vst.msk [vmem:[%s3945_s15 + $0xb8] sm:$0xff] %vm392_vm0, %v2079_v36  ;;  %v2048_v38 = vmul.f32 0.1, %v2016_v37  ;;  %v1985_v31 = vadd.f32 %v1915_v34, %v4281_v56 }
 0x408   : > { %v2080_v21 = vadd.f32 %v2392_v62, %v2048_v38  ;;  %v2017_v43 = vadd.f32 %v1985_v31, %v1825_v6 }
 0x409   : > { %v1917_v50 = vpop.permute.xlu0 %1916 }
 0x40a   : > { %2112 = vst.msk [vmem:[%s3945_s15 + $0xc0] sm:$0xff] %vm392_vm0, %v2080_v21  ;;  %v2049_v15 = vmul.f32 0.1, %v2017_v43  ;;  %v1986_v39 = vadd.f32 %v1917_v50, %v1794_v13 }
 0x40c   : > { %v2081_v2 = vadd.f32 %v2393_v0, %v2049_v15  ;;  %v2018_v7 = vadd.f32 %v1986_v39, %v4284_v52 }
 0x40d   : > { %v1919_v44 = vpop.permute.xlu1 %1918 }
 0x40e   : > { %2113 = vst.msk [vmem:[%s3945_s15 + $0xc8] sm:$0xff] %vm392_vm0, %v2081_v2  ;;  %v2050_v28 = vmul.f32 0.1, %v2018_v7  ;;  %v1987_v5 = vadd.f32 %v1919_v44, %v4285_v54 }
 0x410   : > { %v2082_v58 = vadd.f32 %v2394_v23, %v2050_v28  ;;  %v2019_v20 = vadd.f32 %v1987_v5, %v1827_v48 }
 0x411   : > { %v1921_v27 = vpop.permute.xlu0 %1920 }
 0x412   : > { %2114 = vst.msk [vmem:[%s3945_s15 + $0xd0] sm:$0xff] %vm392_vm0, %v2082_v58  ;;  %v2051_v14 = vmul.f32 0.1, %v2019_v20  ;;  %v1988_v17 = vadd.f32 %v1921_v27, %v1796_v29 }
 0x414   : > { %v2083_v60 = vadd.f32 %v2395_v47, %v2051_v14  ;;  %v2020_v24 = vadd.f32 %v1988_v17, %v3935_v33 }
 0x415   : > { %v1923_v49 = vpop.permute.xlu1 %1922 }
 0x416   : > { %2115 = vst.msk [vmem:[%s3945_s15 + $0xd8] sm:$0xff] %vm392_vm0, %v2083_v60  ;;  %v2052_v51 = vmul.f32 0.1, %v2020_v24  ;;  %v1989_v16 = vadd.f32 %v1923_v49, %v3929_v57 }
 0x418   : > { %v2084_v63 = vadd.f32 %v2396_v22, %v2052_v51  ;;  %v2021_v35 = vadd.f32 %v1989_v16, %v1829_v30 }
 0x419   : > { %v1925_v33 = vpop.permute.xlu0 %1924 }
 0x41a   : > { %2116 = vst.msk [vmem:[%s3945_s15 + $0xe0] sm:$0xff] %vm392_vm0, %v2084_v63  ;;  %v2053_v57 = vmul.f32 0.1, %v2021_v35  ;;  %v1990_v61 = vadd.f32 %v1925_v33, %v1798_v59 }
 0x41c   : > { %v2085_v18 = vadd.f32 %v2397_v1, %v2053_v57  ;;  %v2022_v25 = vadd.f32 %v1990_v61, %v1751_v53 }
 0x41d   : > { %v1927_v26 = vpop.permute.xlu1 %1926 }
 0x41e   : > { %2117 = vst.msk [vmem:[%s3945_s15 + $0xe8] sm:$0xff] %vm392_vm0, %v2085_v18  ;;  %v2054_v9 = vmul.f32 0.1, %v2022_v25  ;;  %v1991_v11 = vadd.f32 %v1927_v26, %v3963_v42 }
 0x420   : > { %v2086_v36 = vadd.f32 %v2398_v19, %v2054_v9  ;;  %v2023_v40 = vadd.f32 %v1991_v11, %v1831_v32 }
 0x422   : > { %2118 = vst.msk [vmem:[%s3945_s15 + $0xf0] sm:$0xff] %vm392_vm0, %v2086_v36  ;;  %v2055_v3 = vmul.f32 0.1, %v2023_v40 }
 0x424   : > { %v2087_v42 = vadd.f32 %v2399_v55, %v2055_v3 }
 0x426   : > { %2119 = vst.msk [vmem:[%s3945_s15 + $0xf8] sm:$0xff] %vm392_vm0, %v2087_v42 }
 0x427   : > { %2467 = shalt.err (!%p2464_p0)
}
 0x428   : > { %s2468_s4 = scalar_lea.hbm %s4176_s25, 4096  ;;  %s2472_s7 = scalar_lea.hbm %s4226_s2, 8192 }
 0x429   : > { %p2469_p5 = scmp.ne.s32.totalorder %s4176_s25, %s2468_s4  ;;  %p2473_p4 = scmp.lt.s32.totalorder %s4176_s25, %s4226_s2 }
 0x42a   : > { %p2474_p6 = scmp.lt.s32.totalorder %s2472_s7, %s2468_s4 }
 0x42b   : > { %p2470_p9 = pnand %p2469_p5, %p4287_p11 }
 0x42c   : > { %p2475_p8 = por %p2474_p6, %p2473_p4 }
 0x42d   : > { %p2471_p1 = pneg %p2470_p9 }
 0x42f   : > { %p2476_p3 = pnand %p2475_p8, %p2471_p1 }
 0x431   : > { %2479 = shalt.err (!%p2476_p3)
}
 0x432   : > { %s2533_s24 = smov 128   ;;  %s2534_s17 = smov 8  }
 0x433   : > { %2309 = dma.vmem_to_hbm [thread:$0]  (%p4287_p11), %s4178_s18, 4096, %s4176_s25, %s2121_s26, %s2533_s24, %s2533_s24, %s2534_s17  }
 0x434 PF: > { %s2149_s15 = sand.u32 1, %s2510_s9   ;;  %p4288_p7 = scmp.ne.s32.totalorder %s4236_s16, 0 }
 0x435   : > { %p4289_p12 = scmp.ge.s32.totalorder %s2522_s12, 2  ;;  %s2150_s8 = scalar_lea.sflag [#allocation4], %s2149_s15 }
 0x437   : > { %p2320_p10 = pnand %p4289_p12, %p4288_p7 }
 0x439   : > { %p2321_p2 = pneg %p2320_p10 }
 0x43b   : > { %2505 = dma.done.wait (%p2321_p2), %s2150_s8, 4096  }
 0x43c   : > { %2507 = vsyncadd (%p2321_p2), %s2150_s8, 4294963200  ;;  %p16_p13 = scmp.ge.s32.totalorder %s2604_s21, 4   ;;  %s4290_s9 = smov %s2514_s10 }
 0x43d   : > { %s4291_s10 = smov %s2518_s11  ;;  %s4292_s11 = smov %s2621_s29 }
 0x43e   : > { %s4293_s12 = smov %s2604_s21  ;;  %18 = sbr.rel (!%p16_p13) target bundleno = 6 (0x6), region = 77 }
 0x443   :  { %2155 = vsyncpa [#allocation3], 1 }
 0x444   :  { %2157 = vsyncpa [#allocation3 + $0x1], 1 }
 0x445   :  { %2158 = vsyncpa [#allocation6], 1 }
 0x446   :  { %2159 = vsyncpa [#allocation4], 1 }
 0x447   :  { %2161 = vsyncpa [#allocation4 + $0x1], 1 }

</bundles_post_ra>
